<compile_context>
chip_gen: v7x
topology: tpu7x:2x2x1
jax: 0.10.0
libtpu: 0.0.40
codegen_flags: <defaults>
</compile_context>

<pallas_src>
import functools

import jax
import jax.numpy as jnp
from jax.experimental import pallas as pl
from jax.experimental.pallas import tpu as pltpu

EPS = 1e-5
_LANE = 128
_TILE_P_MAX = 4096


# ------------------------------ Pallas kernels ------------------------------

def _mm_bias_act_kernel(x_ref, w_ref, b_ref, o_ref, *, relu):
    """o = W @ x + b (+ ReLU).  BN scale pre-folded into W."""
    o = jnp.dot(w_ref[...], x_ref[...], preferred_element_type=jnp.float32)
    o = o + b_ref[...]
    if relu:
        o = jnp.maximum(o, 0.0)
    o_ref[...] = o


def _fourier_conv_kernel(xr_ref, xi_ref, wrr_ref, wri_ref, wir_ref, wii_ref,
                         br_ref, bi_ref, or_ref, oi_ref):
    """FourierUnit 1x1 conv + folded BN + ReLU on separate real/imag planes.

    Equivalent to relu(BN(W @ concat([real; imag]))) with the channel concat /
    split done implicitly by quartering W outside the kernel, so the 2C-channel
    tensor is never materialized in HBM.
    """
    xr = xr_ref[...]
    xi = xi_ref[...]
    o_r = jnp.dot(wrr_ref[...], xr, preferred_element_type=jnp.float32)
    o_r = o_r + jnp.dot(wri_ref[...], xi, preferred_element_type=jnp.float32)
    o_i = jnp.dot(wir_ref[...], xr, preferred_element_type=jnp.float32)
    o_i = o_i + jnp.dot(wii_ref[...], xi, preferred_element_type=jnp.float32)
    or_ref[...] = jnp.maximum(o_r + br_ref[...], 0.0)
    oi_ref[...] = jnp.maximum(o_i + bi_ref[...], 0.0)


def _ffc_out_kernel(xl_ref, xg_ref, z_ref, wst_ref, wg2l_ref, wc2_ref,
                    bl_ref, bg_ref, ol_ref, og_ref, *, out_cl, relu):
    """Fused FFC output paths (both halves in one launch):

      out_l = (s_l*convl2l) @ x_l + (s_l*convg2l) @ x_g + b_l
      out_g = (s_g*convl2g) @ x_l + (s_g*conv2)   @ z   + b_g

    convl2l/convl2g rows are stacked so x_l is hit by a single MXU matmul; the
    SpectralTransform residual arrives through z (conv2 folded here) instead of
    an identity matmul.  Slice at out_cl is sublane-tile aligned (out_cl=8).
    """
    o = jnp.dot(wst_ref[...], xl_ref[...], preferred_element_type=jnp.float32)
    o_l = o[:out_cl] + jnp.dot(wg2l_ref[...], xg_ref[...],
                               preferred_element_type=jnp.float32) + bl_ref[...]
    o_g = o[out_cl:] + jnp.dot(wc2_ref[...], z_ref[...],
                               preferred_element_type=jnp.float32) + bg_ref[...]
    if relu:
        o_l = jnp.maximum(o_l, 0.0)
        o_g = jnp.maximum(o_g, 0.0)
    ol_ref[...] = o_l
    og_ref[...] = o_g


# --------------------------- launch plumbing --------------------------------

def _round_up(x, m):
    return (x + m - 1) // m * m


def _lane_tiles(p):
    """Pad lane dim to a multiple of 128 and pick a tile / grid over it."""
    p128 = _round_up(p, _LANE)
    tp = min(p128, _TILE_P_MAX)
    grid_p = pl.cdiv(p128, tp)
    return grid_p * tp, tp, grid_p


def _pad_lanes(x, p_pad):
    p = x.shape[-1]
    if p == p_pad:
        return x
    return jnp.pad(x, ((0, 0), (0, p_pad - p)))


def _lane_spec(rows, tp):
    return pl.BlockSpec((rows, tp), lambda i: (0, i))


def _whole_spec(shape):
    return pl.BlockSpec(shape, lambda i: (0,) * len(shape))


_CPARAMS = pltpu.CompilerParams(dimension_semantics=("parallel",))


def conv1x1_bias_act(x_flat, w, b, relu):
    """[Cout,Cin] @ [Cin,P] + bias (+ReLU) on flat activations."""
    cout, cin = w.shape
    p = x_flat.shape[1]
    p_pad, tp, grid_p = _lane_tiles(p)
    xp = _pad_lanes(x_flat, p_pad)
    cost = pl.CostEstimate(
        flops=2 * cout * cin * p_pad, transcendentals=0,
        bytes_accessed=4 * (cin * p_pad + cout * cin + cout + cout * p_pad))
    out = pl.pallas_call(
        functools.partial(_mm_bias_act_kernel, relu=relu),
        grid=(grid_p,),
        in_specs=[_lane_spec(cin, tp), _whole_spec((cout, cin)),
                  _whole_spec((cout, 1))],
        out_specs=_lane_spec(cout, tp),
        out_shape=jax.ShapeDtypeStruct((cout, p_pad), jnp.float32),
        compiler_params=_CPARAMS,
        cost_estimate=cost,
    )(xp, w, b)
    return out[:, :p] if p_pad != p else out


def fourier_conv(xr, xi, w_folded, b_folded):
    """FourierUnit conv on separate real/imag planes (weights quartered)."""
    co2, ci2 = w_folded.shape
    co, ci = co2 // 2, ci2 // 2
    p = xr.shape[1]
    p_pad, tp, grid_p = _lane_tiles(p)
    xr_p = _pad_lanes(xr, p_pad)
    xi_p = _pad_lanes(xi, p_pad)
    w_rr, w_ri = w_folded[:co, :ci], w_folded[:co, ci:]
    w_ir, w_ii = w_folded[co:, :ci], w_folded[co:, ci:]
    b_r, b_i = b_folded[:co], b_folded[co:]
    cost = pl.CostEstimate(
        flops=2 * co2 * ci2 * p_pad, transcendentals=0,
        bytes_accessed=4 * (2 * ci * p_pad + co2 * ci2 + co2 + 2 * co * p_pad))
    o_r, o_i = pl.pallas_call(
        _fourier_conv_kernel,
        grid=(grid_p,),
        in_specs=[_lane_spec(ci, tp), _lane_spec(ci, tp),
                  _whole_spec((co, ci)), _whole_spec((co, ci)),
                  _whole_spec((co, ci)), _whole_spec((co, ci)),
                  _whole_spec((co, 1)), _whole_spec((co, 1))],
        out_specs=(_lane_spec(co, tp), _lane_spec(co, tp)),
        out_shape=(jax.ShapeDtypeStruct((co, p_pad), jnp.float32),
                   jax.ShapeDtypeStruct((co, p_pad), jnp.float32)),
        compiler_params=_CPARAMS,
        cost_estimate=cost,
    )(xr_p, xi_p, w_rr, w_ri, w_ir, w_ii, b_r, b_i)
    if p_pad != p:
        o_r, o_i = o_r[:, :p], o_i[:, :p]
    return o_r, o_i


def ffc_out_call(xl_flat, xg_flat, z_flat, w_stack, w_g2l, w_c2,
                 b_l, b_g, out_cl, relu=False):
    """Fused computation of both FFC outputs in one pallas_call."""
    out_tot, in_cl = w_stack.shape
    out_cg = out_tot - out_cl
    in_cg = w_g2l.shape[1]
    c_half = w_c2.shape[1]
    p = xl_flat.shape[1]
    p_pad, tp, grid_p = _lane_tiles(p)
    xl_p = _pad_lanes(xl_flat, p_pad)
    xg_p = _pad_lanes(xg_flat, p_pad)
    z_p = _pad_lanes(z_flat, p_pad)
    flops = 2 * p_pad * (out_tot * in_cl + out_cl * in_cg + out_cg * c_half)
    byt = 4 * ((in_cl + in_cg + c_half + out_tot) * p_pad
               + out_tot * in_cl + out_cl * in_cg + out_cg * c_half + out_tot)
    o_l, o_g = pl.pallas_call(
        functools.partial(_ffc_out_kernel, out_cl=out_cl, relu=relu),
        grid=(grid_p,),
        in_specs=[_lane_spec(in_cl, tp), _lane_spec(in_cg, tp),
                  _lane_spec(c_half, tp),
                  _whole_spec((out_tot, in_cl)), _whole_spec((out_cl, in_cg)),
                  _whole_spec((out_cg, c_half)),
                  _whole_spec((out_cl, 1)), _whole_spec((out_cg, 1))],
        out_specs=(_lane_spec(out_cl, tp), _lane_spec(out_cg, tp)),
        out_shape=(jax.ShapeDtypeStruct((out_cl, p_pad), jnp.float32),
                   jax.ShapeDtypeStruct((out_cg, p_pad), jnp.float32)),
        compiler_params=_CPARAMS,
        cost_estimate=pl.CostEstimate(flops=flops, transcendentals=0,
                                      bytes_accessed=byt),
    )(xl_p, xg_p, z_p, w_stack, w_g2l, w_c2, b_l, b_g)
    if p_pad != p:
        o_l, o_g = o_l[:, :p], o_g[:, :p]
    return o_l, o_g


# ------------------------------ module forward ------------------------------

def _bn_fold(bn):
    gamma, beta, mean, var = bn
    scale = gamma / jnp.sqrt(var + EPS)
    bias = beta - mean * scale
    return (scale[:, None].astype(jnp.float32),
            bias[:, None].astype(jnp.float32))


def _to_flat(x_nchw):
    n, c, h, w = x_nchw.shape
    return jnp.transpose(x_nchw, (1, 0, 2, 3)).reshape(c, n * h * w)


def _from_flat(y_flat, n, h, w):
    c = y_flat.shape[0]
    return jnp.transpose(y_flat.reshape(c, n, h, w), (1, 0, 2, 3))


def fourier_unit(x_cnhw, p):
    """FourierUnit on a CNHW view: rfft2 -> Pallas conv/BN/ReLU -> irfft2."""
    c, n, h, w = x_cnhw.shape
    ff = jnp.fft.rfft2(x_cnhw, s=(h, w), axes=(2, 3), norm='ortho')
    wf = ff.shape[-1]
    pf = n * h * wf
    xr = ff.real.astype(jnp.float32).reshape(c, pf)
    xi = ff.imag.astype(jnp.float32).reshape(c, pf)
    s, b = _bn_fold(p['bn'])
    w_folded = s * p['conv_w']              # BN scale folded into weights
    o_r, o_i = fourier_conv(xr, xi, w_folded, b)
    co = w_folded.shape[0] // 2
    comp = (o_r + 1j * o_i).reshape(co, n, h, wf)
    out = jnp.fft.irfft2(comp, s=(h, w), axes=(2, 3), norm='ortho')
    return out.astype(jnp.float32)


def spectral_transform_pre_conv2(xg_flat, nhw, p, enable_lfu=True):
    """SpectralTransform up to (but excluding) conv2.

    Returns z = x + fu(x) + lfu(x), flattened [c_half, N*H*W].  conv2 and BN_g
    are folded into the fused FFC output kernel.
    """
    n, h, w = nhw
    s1, b1 = _bn_fold(p['bn1'])
    x1_flat = conv1x1_bias_act(xg_flat, s1 * p['conv1_w'], b1, relu=True)
    c = x1_flat.shape[0]
    x1 = x1_flat.reshape(c, n, h, w)         # CNHW view, no transpose
    out_fu = fourier_unit(x1, p['fu'])
    if enable_lfu:
        sh, sw = h // 2, w // 2
        xs = x1[:c // 4]
        xs = jnp.concatenate([xs[:, :, :sh, :], xs[:, :, sh:, :]], axis=0)
        xs = jnp.concatenate([xs[:, :, :, :sw], xs[:, :, :, sw:]], axis=0)
        xs = fourier_unit(xs, p['lfu'])
        xs = jnp.tile(xs, (1, 1, 2, 2))
    else:
        xs = 0.0
    z = x1 + out_fu + xs
    return z.reshape(c, n * h * w)


def ffc_bn_act(x_l, x_g, params):
    """FFC_BN_ACT forward (Pallas).  NCHW in, (out_l, out_g) NCHW out."""
    n, _, h, w = x_l.shape
    xl_flat = _to_flat(x_l)
    xg_flat = _to_flat(x_g)

    z_flat = spectral_transform_pre_conv2(xg_flat, (n, h, w),
                                          params['convg2g'], enable_lfu=True)

    s_l, b_l = _bn_fold(params['bn_l'])
    s_g, b_g = _bn_fold(params['bn_g'])
    w_stack = jnp.concatenate([s_l * params['convl2l_w'],
                               s_g * params['convl2g_w']], axis=0)
    w_g2l = s_l * params['convg2l_w']
    w_c2 = s_g * params['convg2g']['conv2_w']
    out_cl = params['convl2l_w'].shape[0]

    ol_flat, og_flat = ffc_out_call(xl_flat, xg_flat, z_flat,
                                    w_stack, w_g2l, w_c2, b_l, b_g,
                                    out_cl, relu=False)   # activation = Identity
    return _from_flat(ol_flat, n, h, w), _from_flat(og_flat, n, h, w)


# --------------------------- pure-JAX reference ------------------------------

def _bn_ref(x, bn):
    gamma, beta, mean, var = bn
    inv = gamma / jnp.sqrt(var + EPS)
    return ((x - mean[None, :, None, None]) * inv[None, :, None, None]
            + beta[None, :, None, None])


def _conv1x1_ref(x, w):
    return jnp.einsum('oc,nchw->nohw', w, x)


def _fourier_unit_ref(x, p):
    n, c, h, w = x.shape
    ff = jnp.fft.rfft2(x, s=(h, w), axes=(2, 3), norm='ortho')
    f = jnp.concatenate([ff.real, ff.imag], axis=1).astype(jnp.float32)
    y = jax.nn.relu(_bn_ref(_conv1x1_ref(f, p['conv_w']), p['bn']))
    r, i = jnp.split(y, 2, axis=1)
    out = jnp.fft.irfft2(r + 1j * i, s=(h, w), axes=(2, 3), norm='ortho')
    return out.astype(jnp.float32)


def _spectral_transform_ref(x, p, enable_lfu=True):
    x = jax.nn.relu(_bn_ref(_conv1x1_ref(x, p['conv1_w']), p['bn1']))
    output = _fourier_unit_ref(x, p['fu'])
    if enable_lfu:
        n, c, h, w = x.shape
        sh, sw = h // 2, w // 2
        xs = x[:, :c // 4]
        xs = jnp.concatenate([xs[:, :, :sh, :], xs[:, :, sh:, :]], axis=1)
        xs = jnp.concatenate([xs[:, :, :, :sw], xs[:, :, :, sw:]], axis=1)
        xs = _fourier_unit_ref(xs, p['lfu'])
        xs = jnp.tile(xs, (1, 1, 2, 2))
    else:
        xs = 0.0
    return _conv1x1_ref(x + output + xs, p['conv2_w'])


def ffc_bn_act_ref(x_l, x_g, params):
    out_l = (_conv1x1_ref(x_l, params['convl2l_w'])
             + _conv1x1_ref(x_g, params['convg2l_w']))
    out_g = (_conv1x1_ref(x_l, params['convl2g_w'])
             + _spectral_transform_ref(x_g, params['convg2g']))
    out_l = _bn_ref(out_l, params['bn_l'])   # act = Identity
    out_g = _bn_ref(out_g, params['bn_g'])
    return out_l, out_g


# ------------------------------ parameter init ------------------------------

def _bn_init(key, c):
    k1, k2, k3, k4 = jax.random.split(key, 4)
    gamma = jax.random.uniform(k1, (c,), jnp.float32, 0.5, 1.5)
    beta = jax.random.normal(k2, (c,), jnp.float32) * 0.1
    mean = jax.random.normal(k3, (c,), jnp.float32) * 0.1
    var = jax.random.uniform(k4, (c,), jnp.float32, 0.5, 1.5)
    return gamma, beta, mean, var


def _w_init(key, cout, cin):
    return jax.random.normal(key, (cout, cin), jnp.float32) * 0.1


def init_params(key, in_channels=16, out_channels=16,
                ratio_gin=0.5, ratio_gout=0.5):
    in_cg = int(in_channels * ratio_gin)
    in_cl = in_channels - in_cg
    out_cg = int(out_channels * ratio_gout)
    out_cl = out_channels - out_cg
    ks = jax.random.split(key, 12)
    c_half = out_cg // 2  # SpectralTransform internal width
    return {
        'convl2l_w': _w_init(ks[0], out_cl, in_cl),
        'convl2g_w': _w_init(ks[1], out_cg, in_cl),
        'convg2l_w': _w_init(ks[2], out_cl, in_cg),
        'convg2g': {
            'conv1_w': _w_init(ks[3], c_half, in_cg),
            'bn1': _bn_init(ks[4], c_half),
            'fu': {'conv_w': _w_init(ks[5], 2 * c_half, 2 * c_half),
                   'bn': _bn_init(ks[6], 2 * c_half)},
            'lfu': {'conv_w': _w_init(ks[7], 2 * c_half, 2 * c_half),
                    'bn': _bn_init(ks[8], 2 * c_half)},
            'conv2_w': _w_init(ks[9], out_cg, c_half),
        },
        'bn_l': _bn_init(ks[10], out_cl),
        'bn_g': _bn_init(ks[11], out_cg),
    }


# ----------------------------------- main -----------------------------------

if __name__ == "__main__":
    key = jax.random.PRNGKey(0)
    kx1, kx2, kp = jax.random.split(key, 3)

    N, H, W = 2, 16, 16
    in_channels = out_channels = 16
    in_cg = in_channels // 2
    in_cl = in_channels - in_cg

    x_l = jax.random.normal(kx1, (N, in_cl, H, W), jnp.float32)
    x_g = jax.random.normal(kx2, (N, in_cg, H, W), jnp.float32)
    params = init_params(kp, in_channels, out_channels, 0.5, 0.5)

    fwd = jax.jit(ffc_bn_act)
    out_l, out_g = fwd(x_l, x_g, params)
    jax.block_until_ready((out_l, out_g))

    # pure-JAX reference mirroring the PyTorch module (unfolded BN, NCHW)
    ref_l, ref_g = ffc_bn_act_ref(x_l, x_g, params)
    assert out_l.shape == (N, out_channels // 2, H, W)
    assert out_g.shape == (N, out_channels // 2, H, W)
    assert jnp.allclose(out_l, ref_l, atol=1e-3, rtol=1e-3)
    assert jnp.allclose(out_g, ref_g, atol=1e-3, rtol=1e-3)

    print("KERNEL_OK")
</pallas_src>

<mosaic_0001>
module attributes {stable_mosaic.version = 11 : i64} {
  func.func @_mm_bias_act_kernel(%arg0: i32, %arg1: memref<8x512xf32, #tpu.memory_space<vmem>>, %arg2: memref<4x8xf32, #tpu.memory_space<vmem>>, %arg3: memref<4x1xf32, #tpu.memory_space<vmem>>, %arg4: memref<4x512xf32, #tpu.memory_space<vmem>>) attributes {dimension_semantics = [#tpu.dimension_semantics<parallel>], iteration_bounds = array<i64: 1>, scalar_prefetch = 0 : i64, scratch_operands = 0 : i64, tpu.core_type = #tpu.core_type<tc>, window_params = [{transform_indices = @transform_0, window_bounds = array<i64: 8, 512>}, {pipeline_mode = #tpu.pipeline_mode<synchronous>, transform_indices = @transform_1, window_bounds = array<i64: 4, 8>}, {pipeline_mode = #tpu.pipeline_mode<synchronous>, transform_indices = @transform_2, window_bounds = array<i64: 4, 1>}, {transform_indices = @transform_3, window_bounds = array<i64: 4, 512>}]} {
    %c0 = arith.constant 0 : index
    %c0_0 = arith.constant 0 : index
    %0 = vector.load %arg2[%c0, %c0_0] : memref<4x8xf32, #tpu.memory_space<vmem>>, vector<4x8xf32>
    %c0_1 = arith.constant 0 : index
    %c0_2 = arith.constant 0 : index
    %1 = vector.load %arg1[%c0_1, %c0_2] : memref<8x512xf32, #tpu.memory_space<vmem>>, vector<8x512xf32>
    %cst = arith.constant dense<0.000000e+00> : vector<4x512xf32>
    %2 = tpu.matmul %0, %1, %cst {dimension_numbers = #tpu.dot_dimension_numbers<[1], [0], [0], [1], [0, 0, 1, 1], [], []>} : vector<4x8xf32>, vector<8x512xf32>, vector<4x512xf32> -> vector<4x512xf32>
    %c0_3 = arith.constant 0 : index
    %c0_4 = arith.constant 0 : index
    %3 = vector.load %arg3[%c0_3, %c0_4] : memref<4x1xf32, #tpu.memory_space<vmem>>, vector<4x1xf32>
    %4 = vector.broadcast %3 : vector<4x1xf32> to vector<4x512xf32>
    %5 = arith.addf %2, %4 : vector<4x512xf32>
    %cst_5 = arith.constant 0.000000e+00 : f32
    %6 = vector.broadcast %cst_5 : f32 to vector<4x512xf32>
    %7 = arith.maximumf %5, %6 : vector<4x512xf32>
    %c0_6 = arith.constant 0 : index
    %c0_7 = arith.constant 0 : index
    %8 = vector.load %arg4[%c0_6, %c0_7] : memref<4x512xf32, #tpu.memory_space<vmem>>, vector<4x512xf32>
    tpu.vector_store %arg4[%c0_6, %c0_7], %7 {strides = array<i32>} : memref<4x512xf32, #tpu.memory_space<vmem>>, vector<4x512xf32>,
    return
  }
  func.func @transform_0(%arg0: i32) -> (i32, i32) {
    %c0_i32 = arith.constant 0 : i32
    %c0_i32_0 = arith.constant 0 : i32
    return %c0_i32, %arg0 : i32, i32
  }
  func.func @transform_1(%arg0: i32) -> (i32, i32) {
    %c0_i32 = arith.constant 0 : i32
    %c0_i32_0 = arith.constant 0 : i32
    %c0_i32_1 = arith.constant 0 : i32
    return %c0_i32, %c0_i32_0 : i32, i32
  }
  func.func @transform_2(%arg0: i32) -> (i32, i32) {
    %c0_i32 = arith.constant 0 : i32
    %c0_i32_0 = arith.constant 0 : i32
    %c0_i32_1 = arith.constant 0 : i32
    return %c0_i32, %c0_i32_0 : i32, i32
  }
  func.func @transform_3(%arg0: i32) -> (i32, i32) {
    %c0_i32 = arith.constant 0 : i32
    %c0_i32_0 = arith.constant 0 : i32
    return %c0_i32, %arg0 : i32, i32
  }
}

module attributes {stable_mosaic.version = 11 : i64} {
  func.func @_fourier_conv_kernel(%arg0: i32, %arg1: memref<4x128xf32, #tpu.memory_space<vmem>>, %arg2: memref<4x128xf32, #tpu.memory_space<vmem>>, %arg3: memref<4x4xf32, #tpu.memory_space<vmem>>, %arg4: memref<4x4xf32, #tpu.memory_space<vmem>>, %arg5: memref<4x4xf32, #tpu.memory_space<vmem>>, %arg6: memref<4x4xf32, #tpu.memory_space<vmem>>, %arg7: memref<4x1xf32, #tpu.memory_space<vmem>>, %arg8: memref<4x1xf32, #tpu.memory_space<vmem>>, %arg9: memref<4x128xf32, #tpu.memory_space<vmem>>, %arg10: memref<4x128xf32, #tpu.memory_space<vmem>>) attributes {dimension_semantics = [#tpu.dimension_semantics<parallel>], iteration_bounds = array<i64: 1>, scalar_prefetch = 0 : i64, scratch_operands = 0 : i64, tpu.core_type = #tpu.core_type<tc>, window_params = [{transform_indices = @transform_0, window_bounds = array<i64: 4, 128>}, {transform_indices = @transform_1, window_bounds = array<i64: 4, 128>}, {pipeline_mode = #tpu.pipeline_mode<synchronous>, transform_indices = @transform_2, window_bounds = array<i64: 4, 4>}, {pipeline_mode = #tpu.pipeline_mode<synchronous>, transform_indices = @transform_3, window_bounds = array<i64: 4, 4>}, {pipeline_mode = #tpu.pipeline_mode<synchronous>, transform_indices = @transform_4, window_bounds = array<i64: 4, 4>}, {pipeline_mode = #tpu.pipeline_mode<synchronous>, transform_indices = @transform_5, window_bounds = array<i64: 4, 4>}, {pipeline_mode = #tpu.pipeline_mode<synchronous>, transform_indices = @transform_6, window_bounds = array<i64: 4, 1>}, {pipeline_mode = #tpu.pipeline_mode<synchronous>, transform_indices = @transform_7, window_bounds = array<i64: 4, 1>}, {transform_indices = @transform_8, window_bounds = array<i64: 4, 128>}, {transform_indices = @transform_9, window_bounds = array<i64: 4, 128>}]} {
    %c0 = arith.constant 0 : index
    %c0_0 = arith.constant 0 : index
    %0 = vector.load %arg1[%c0, %c0_0] : memref<4x128xf32, #tpu.memory_space<vmem>>, vector<4x128xf32>
    %c0_1 = arith.constant 0 : index
    %c0_2 = arith.constant 0 : index
    %1 = vector.load %arg2[%c0_1, %c0_2] : memref<4x128xf32, #tpu.memory_space<vmem>>, vector<4x128xf32>
    %c0_3 = arith.constant 0 : index
    %c0_4 = arith.constant 0 : index
    %2 = vector.load %arg3[%c0_3, %c0_4] : memref<4x4xf32, #tpu.memory_space<vmem>>, vector<4x4xf32>
    %cst = arith.constant dense<0.000000e+00> : vector<4x128xf32>
    %3 = tpu.matmul %2, %0, %cst {dimension_numbers = #tpu.dot_dimension_numbers<[1], [0], [0], [1], [0, 0, 1, 1], [], []>} : vector<4x4xf32>, vector<4x128xf32>, vector<4x128xf32> -> vector<4x128xf32>
    %c0_5 = arith.constant 0 : index
    %c0_6 = arith.constant 0 : index
    %4 = vector.load %arg4[%c0_5, %c0_6] : memref<4x4xf32, #tpu.memory_space<vmem>>, vector<4x4xf32>
    %cst_7 = arith.constant dense<0.000000e+00> : vector<4x128xf32>
    %5 = tpu.matmul %4, %1, %cst_7 {dimension_numbers = #tpu.dot_dimension_numbers<[1], [0], [0], [1], [0, 0, 1, 1], [], []>} : vector<4x4xf32>, vector<4x128xf32>, vector<4x128xf32> -> vector<4x128xf32>
    %6 = arith.addf %3, %5 : vector<4x128xf32>
    %c0_8 = arith.constant 0 : index
    %c0_9 = arith.constant 0 : index
    %7 = vector.load %arg5[%c0_8, %c0_9] : memref<4x4xf32, #tpu.memory_space<vmem>>, vector<4x4xf32>
    %cst_10 = arith.constant dense<0.000000e+00> : vector<4x128xf32>
    %8 = tpu.matmul %7, %0, %cst_10 {dimension_numbers = #tpu.dot_dimension_numbers<[1], [0], [0], [1], [0, 0, 1, 1], [], []>} : vector<4x4xf32>, vector<4x128xf32>, vector<4x128xf32> -> vector<4x128xf32>
    %c0_11 = arith.constant 0 : index
    %c0_12 = arith.constant 0 : index
    %9 = vector.load %arg6[%c0_11, %c0_12] : memref<4x4xf32, #tpu.memory_space<vmem>>, vector<4x4xf32>
    %cst_13 = arith.constant dense<0.000000e+00> : vector<4x128xf32>
    %10 = tpu.matmul %9, %1, %cst_13 {dimension_numbers = #tpu.dot_dimension_numbers<[1], [0], [0], [1], [0, 0, 1, 1], [], []>} : vector<4x4xf32>, vector<4x128xf32>, vector<4x128xf32> -> vector<4x128xf32>
    %11 = arith.addf %8, %10 : vector<4x128xf32>
    %c0_14 = arith.constant 0 : index
    %c0_15 = arith.constant 0 : index
    %12 = vector.load %arg7[%c0_14, %c0_15] : memref<4x1xf32, #tpu.memory_space<vmem>>, vector<4x1xf32>
    %13 = vector.broadcast %12 : vector<4x1xf32> to vector<4x128xf32>
    %14 = arith.addf %6, %13 : vector<4x128xf32>
    %cst_16 = arith.constant 0.000000e+00 : f32
    %15 = vector.broadcast %cst_16 : f32 to vector<4x128xf32>
    %16 = arith.maximumf %14, %15 : vector<4x128xf32>
    %c0_17 = arith.constant 0 : index
    %c0_18 = arith.constant 0 : index
    %17 = vector.load %arg9[%c0_17, %c0_18] : memref<4x128xf32, #tpu.memory_space<vmem>>, vector<4x128xf32>
    tpu.vector_store %arg9[%c0_17, %c0_18], %16 {strides = array<i32>} : memref<4x128xf32, #tpu.memory_space<vmem>>, vector<4x128xf32>,
    %c0_19 = arith.constant 0 : index
    %c0_20 = arith.constant 0 : index
    %18 = vector.load %arg8[%c0_19, %c0_20] : memref<4x1xf32, #tpu.memory_space<vmem>>, vector<4x1xf32>
    %19 = vector.broadcast %18 : vector<4x1xf32> to vector<4x128xf32>
    %20 = arith.addf %11, %19 : vector<4x128xf32>
    %cst_21 = arith.constant 0.000000e+00 : f32
    %21 = vector.broadcast %cst_21 : f32 to vector<4x128xf32>
    %22 = arith.maximumf %20, %21 : vector<4x128xf32>
    %c0_22 = arith.constant 0 : index
    %c0_23 = arith.constant 0 : index
    %23 = vector.load %arg10[%c0_22, %c0_23] : memref<4x128xf32, #tpu.memory_space<vmem>>, vector<4x128xf32>
    tpu.vector_store %arg10[%c0_22, %c0_23], %22 {strides = array<i32>} : memref<4x128xf32, #tpu.memory_space<vmem>>, vector<4x128xf32>,
    return
  }
  func.func @transform_0(%arg0: i32) -> (i32, i32) {
    %c0_i32 = arith.constant 0 : i32
    %c0_i32_0 = arith.constant 0 : i32
    return %c0_i32, %arg0 : i32, i32
  }
  func.func @transform_1(%arg0: i32) -> (i32, i32) {
    %c0_i32 = arith.constant 0 : i32
    %c0_i32_0 = arith.constant 0 : i32
    return %c0_i32, %arg0 : i32, i32
  }
  func.func @transform_2(%arg0: i32) -> (i32, i32) {
    %c0_i32 = arith.constant 0 : i32
    %c0_i32_0 = arith.constant 0 : i32
    %c0_i32_1 = arith.constant 0 : i32
    return %c0_i32, %c0_i32_0 : i32, i32
  }
  func.func @transform_3(%arg0: i32) -> (i32, i32) {
    %c0_i32 = arith.constant 0 : i32
    %c0_i32_0 = arith.constant 0 : i32
    %c0_i32_1 = arith.constant 0 : i32
    return %c0_i32, %c0_i32_0 : i32, i32
  }
  func.func @transform_4(%arg0: i32) -> (i32, i32) {
    %c0_i32 = arith.constant 0 : i32
    %c0_i32_0 = arith.constant 0 : i32
    %c0_i32_1 = arith.constant 0 : i32
    return %c0_i32, %c0_i32_0 : i32, i32
  }
  func.func @transform_5(%arg0: i32) -> (i32, i32) {
    %c0_i32 = arith.constant 0 : i32
    %c0_i32_0 = arith.constant 0 : i32
    %c0_i32_1 = arith.constant 0 : i32
    return %c0_i32, %c0_i32_0 : i32, i32
  }
  func.func @transform_6(%arg0: i32) -> (i32, i32) {
    %c0_i32 = arith.constant 0 : i32
    %c0_i32_0 = arith.constant 0 : i32
    %c0_i32_1 = arith.constant 0 : i32
    return %c0_i32, %c0_i32_0 : i32, i32
  }
  func.func @transform_7(%arg0: i32) -> (i32, i32) {
    %c0_i32 = arith.constant 0 : i32
    %c0_i32_0 = arith.constant 0 : i32
    %c0_i32_1 = arith.constant 0 : i32
    return %c0_i32, %c0_i32_0 : i32, i32
  }
  func.func @transform_8(%arg0: i32) -> (i32, i32) {
    %c0_i32 = arith.constant 0 : i32
    %c0_i32_0 = arith.constant 0 : i32
    return %c0_i32, %arg0 : i32, i32
  }
  func.func @transform_9(%arg0: i32) -> (i32, i32) {
    %c0_i32 = arith.constant 0 : i32
    %c0_i32_0 = arith.constant 0 : i32
    return %c0_i32, %arg0 : i32, i32
  }
}

module attributes {stable_mosaic.version = 11 : i64} {
  func.func @_fourier_conv_kernel(%arg0: i32, %arg1: memref<4x384xf32, #tpu.memory_space<vmem>>, %arg2: memref<4x384xf32, #tpu.memory_space<vmem>>, %arg3: memref<4x4xf32, #tpu.memory_space<vmem>>, %arg4: memref<4x4xf32, #tpu.memory_space<vmem>>, %arg5: memref<4x4xf32, #tpu.memory_space<vmem>>, %arg6: memref<4x4xf32, #tpu.memory_space<vmem>>, %arg7: memref<4x1xf32, #tpu.memory_space<vmem>>, %arg8: memref<4x1xf32, #tpu.memory_space<vmem>>, %arg9: memref<4x384xf32, #tpu.memory_space<vmem>>, %arg10: memref<4x384xf32, #tpu.memory_space<vmem>>) attributes {dimension_semantics = [#tpu.dimension_semantics<parallel>], iteration_bounds = array<i64: 1>, scalar_prefetch = 0 : i64, scratch_operands = 0 : i64, tpu.core_type = #tpu.core_type<tc>, window_params = [{transform_indices = @transform_0, window_bounds = array<i64: 4, 384>}, {transform_indices = @transform_1, window_bounds = array<i64: 4, 384>}, {pipeline_mode = #tpu.pipeline_mode<synchronous>, transform_indices = @transform_2, window_bounds = array<i64: 4, 4>}, {pipeline_mode = #tpu.pipeline_mode<synchronous>, transform_indices = @transform_3, window_bounds = array<i64: 4, 4>}, {pipeline_mode = #tpu.pipeline_mode<synchronous>, transform_indices = @transform_4, window_bounds = array<i64: 4, 4>}, {pipeline_mode = #tpu.pipeline_mode<synchronous>, transform_indices = @transform_5, window_bounds = array<i64: 4, 4>}, {pipeline_mode = #tpu.pipeline_mode<synchronous>, transform_indices = @transform_6, window_bounds = array<i64: 4, 1>}, {pipeline_mode = #tpu.pipeline_mode<synchronous>, transform_indices = @transform_7, window_bounds = array<i64: 4, 1>}, {transform_indices = @transform_8, window_bounds = array<i64: 4, 384>}, {transform_indices = @transform_9, window_bounds = array<i64: 4, 384>}]} {
    %c0 = arith.constant 0 : index
    %c0_0 = arith.constant 0 : index
    %0 = vector.load %arg1[%c0, %c0_0] : memref<4x384xf32, #tpu.memory_space<vmem>>, vector<4x384xf32>
    %c0_1 = arith.constant 0 : index
    %c0_2 = arith.constant 0 : index
    %1 = vector.load %arg2[%c0_1, %c0_2] : memref<4x384xf32, #tpu.memory_space<vmem>>, vector<4x384xf32>
    %c0_3 = arith.constant 0 : index
    %c0_4 = arith.constant 0 : index
    %2 = vector.load %arg3[%c0_3, %c0_4] : memref<4x4xf32, #tpu.memory_space<vmem>>, vector<4x4xf32>
    %cst = arith.constant dense<0.000000e+00> : vector<4x384xf32>
    %3 = tpu.matmul %2, %0, %cst {dimension_numbers = #tpu.dot_dimension_numbers<[1], [0], [0], [1], [0, 0, 1, 1], [], []>} : vector<4x4xf32>, vector<4x384xf32>, vector<4x384xf32> -> vector<4x384xf32>
    %c0_5 = arith.constant 0 : index
    %c0_6 = arith.constant 0 : index
    %4 = vector.load %arg4[%c0_5, %c0_6] : memref<4x4xf32, #tpu.memory_space<vmem>>, vector<4x4xf32>
    %cst_7 = arith.constant dense<0.000000e+00> : vector<4x384xf32>
    %5 = tpu.matmul %4, %1, %cst_7 {dimension_numbers = #tpu.dot_dimension_numbers<[1], [0], [0], [1], [0, 0, 1, 1], [], []>} : vector<4x4xf32>, vector<4x384xf32>, vector<4x384xf32> -> vector<4x384xf32>
    %6 = arith.addf %3, %5 : vector<4x384xf32>
    %c0_8 = arith.constant 0 : index
    %c0_9 = arith.constant 0 : index
    %7 = vector.load %arg5[%c0_8, %c0_9] : memref<4x4xf32, #tpu.memory_space<vmem>>, vector<4x4xf32>
    %cst_10 = arith.constant dense<0.000000e+00> : vector<4x384xf32>
    %8 = tpu.matmul %7, %0, %cst_10 {dimension_numbers = #tpu.dot_dimension_numbers<[1], [0], [0], [1], [0, 0, 1, 1], [], []>} : vector<4x4xf32>, vector<4x384xf32>, vector<4x384xf32> -> vector<4x384xf32>
    %c0_11 = arith.constant 0 : index
    %c0_12 = arith.constant 0 : index
    %9 = vector.load %arg6[%c0_11, %c0_12] : memref<4x4xf32, #tpu.memory_space<vmem>>, vector<4x4xf32>
    %cst_13 = arith.constant dense<0.000000e+00> : vector<4x384xf32>
    %10 = tpu.matmul %9, %1, %cst_13 {dimension_numbers = #tpu.dot_dimension_numbers<[1], [0], [0], [1], [0, 0, 1, 1], [], []>} : vector<4x4xf32>, vector<4x384xf32>, vector<4x384xf32> -> vector<4x384xf32>
    %11 = arith.addf %8, %10 : vector<4x384xf32>
    %c0_14 = arith.constant 0 : index
    %c0_15 = arith.constant 0 : index
    %12 = vector.load %arg7[%c0_14, %c0_15] : memref<4x1xf32, #tpu.memory_space<vmem>>, vector<4x1xf32>
    %13 = vector.broadcast %12 : vector<4x1xf32> to vector<4x384xf32>
    %14 = arith.addf %6, %13 : vector<4x384xf32>
    %cst_16 = arith.constant 0.000000e+00 : f32
    %15 = vector.broadcast %cst_16 : f32 to vector<4x384xf32>
    %16 = arith.maximumf %14, %15 : vector<4x384xf32>
    %c0_17 = arith.constant 0 : index
    %c0_18 = arith.constant 0 : index
    %17 = vector.load %arg9[%c0_17, %c0_18] : memref<4x384xf32, #tpu.memory_space<vmem>>, vector<4x384xf32>
    tpu.vector_store %arg9[%c0_17, %c0_18], %16 {strides = array<i32>} : memref<4x384xf32, #tpu.memory_space<vmem>>, vector<4x384xf32>,
    %c0_19 = arith.constant 0 : index
    %c0_20 = arith.constant 0 : index
    %18 = vector.load %arg8[%c0_19, %c0_20] : memref<4x1xf32, #tpu.memory_space<vmem>>, vector<4x1xf32>
    %19 = vector.broadcast %18 : vector<4x1xf32> to vector<4x384xf32>
    %20 = arith.addf %11, %19 : vector<4x384xf32>
    %cst_21 = arith.constant 0.000000e+00 : f32
    %21 = vector.broadcast %cst_21 : f32 to vector<4x384xf32>
    %22 = arith.maximumf %20, %21 : vector<4x384xf32>
    %c0_22 = arith.constant 0 : index
    %c0_23 = arith.constant 0 : index
    %23 = vector.load %arg10[%c0_22, %c0_23] : memref<4x384xf32, #tpu.memory_space<vmem>>, vector<4x384xf32>
    tpu.vector_store %arg10[%c0_22, %c0_23], %22 {strides = array<i32>} : memref<4x384xf32, #tpu.memory_space<vmem>>, vector<4x384xf32>,
    return
  }
  func.func @transform_0(%arg0: i32) -> (i32, i32) {
    %c0_i32 = arith.constant 0 : i32
    %c0_i32_0 = arith.constant 0 : i32
    return %c0_i32, %arg0 : i32, i32
  }
  func.func @transform_1(%arg0: i32) -> (i32, i32) {
    %c0_i32 = arith.constant 0 : i32
    %c0_i32_0 = arith.constant 0 : i32
    return %c0_i32, %arg0 : i32, i32
  }
  func.func @transform_2(%arg0: i32) -> (i32, i32) {
    %c0_i32 = arith.constant 0 : i32
    %c0_i32_0 = arith.constant 0 : i32
    %c0_i32_1 = arith.constant 0 : i32
    return %c0_i32, %c0_i32_0 : i32, i32
  }
  func.func @transform_3(%arg0: i32) -> (i32, i32) {
    %c0_i32 = arith.constant 0 : i32
    %c0_i32_0 = arith.constant 0 : i32
    %c0_i32_1 = arith.constant 0 : i32
    return %c0_i32, %c0_i32_0 : i32, i32
  }
  func.func @transform_4(%arg0: i32) -> (i32, i32) {
    %c0_i32 = arith.constant 0 : i32
    %c0_i32_0 = arith.constant 0 : i32
    %c0_i32_1 = arith.constant 0 : i32
    return %c0_i32, %c0_i32_0 : i32, i32
  }
  func.func @transform_5(%arg0: i32) -> (i32, i32) {
    %c0_i32 = arith.constant 0 : i32
    %c0_i32_0 = arith.constant 0 : i32
    %c0_i32_1 = arith.constant 0 : i32
    return %c0_i32, %c0_i32_0 : i32, i32
  }
  func.func @transform_6(%arg0: i32) -> (i32, i32) {
    %c0_i32 = arith.constant 0 : i32
    %c0_i32_0 = arith.constant 0 : i32
    %c0_i32_1 = arith.constant 0 : i32
    return %c0_i32, %c0_i32_0 : i32, i32
  }
  func.func @transform_7(%arg0: i32) -> (i32, i32) {
    %c0_i32 = arith.constant 0 : i32
    %c0_i32_0 = arith.constant 0 : i32
    %c0_i32_1 = arith.constant 0 : i32
    return %c0_i32, %c0_i32_0 : i32, i32
  }
  func.func @transform_8(%arg0: i32) -> (i32, i32) {
    %c0_i32 = arith.constant 0 : i32
    %c0_i32_0 = arith.constant 0 : i32
    return %c0_i32, %arg0 : i32, i32
  }
  func.func @transform_9(%arg0: i32) -> (i32, i32) {
    %c0_i32 = arith.constant 0 : i32
    %c0_i32_0 = arith.constant 0 : i32
    return %c0_i32, %arg0 : i32, i32
  }
}

module attributes {stable_mosaic.version = 11 : i64} {
  func.func @_ffc_out_kernel(%arg0: i32, %arg1: memref<8x512xf32, #tpu.memory_space<vmem>>, %arg2: memref<8x512xf32, #tpu.memory_space<vmem>>, %arg3: memref<4x512xf32, #tpu.memory_space<vmem>>, %arg4: memref<16x8xf32, #tpu.memory_space<vmem>>, %arg5: memref<8x8xf32, #tpu.memory_space<vmem>>, %arg6: memref<8x4xf32, #tpu.memory_space<vmem>>, %arg7: memref<8x1xf32, #tpu.memory_space<vmem>>, %arg8: memref<8x1xf32, #tpu.memory_space<vmem>>, %arg9: memref<8x512xf32, #tpu.memory_space<vmem>>, %arg10: memref<8x512xf32, #tpu.memory_space<vmem>>) attributes {dimension_semantics = [#tpu.dimension_semantics<parallel>], iteration_bounds = array<i64: 1>, scalar_prefetch = 0 : i64, scratch_operands = 0 : i64, tpu.core_type = #tpu.core_type<tc>, window_params = [{transform_indices = @transform_0, window_bounds = array<i64: 8, 512>}, {transform_indices = @transform_1, window_bounds = array<i64: 8, 512>}, {transform_indices = @transform_2, window_bounds = array<i64: 4, 512>}, {pipeline_mode = #tpu.pipeline_mode<synchronous>, transform_indices = @transform_3, window_bounds = array<i64: 16, 8>}, {pipeline_mode = #tpu.pipeline_mode<synchronous>, transform_indices = @transform_4, window_bounds = array<i64: 8, 8>}, {pipeline_mode = #tpu.pipeline_mode<synchronous>, transform_indices = @transform_5, window_bounds = array<i64: 8, 4>}, {pipeline_mode = #tpu.pipeline_mode<synchronous>, transform_indices = @transform_6, window_bounds = array<i64: 8, 1>}, {pipeline_mode = #tpu.pipeline_mode<synchronous>, transform_indices = @transform_7, window_bounds = array<i64: 8, 1>}, {transform_indices = @transform_8, window_bounds = array<i64: 8, 512>}, {transform_indices = @transform_9, window_bounds = array<i64: 8, 512>}]} {
    %c0 = arith.constant 0 : index
    %c0_0 = arith.constant 0 : index
    %0 = vector.load %arg4[%c0, %c0_0] : memref<16x8xf32, #tpu.memory_space<vmem>>, vector<16x8xf32>
    %c0_1 = arith.constant 0 : index
    %c0_2 = arith.constant 0 : index
    %1 = vector.load %arg1[%c0_1, %c0_2] : memref<8x512xf32, #tpu.memory_space<vmem>>, vector<8x512xf32>
    %cst = arith.constant dense<0.000000e+00> : vector<16x512xf32>
    %2 = tpu.matmul %0, %1, %cst {dimension_numbers = #tpu.dot_dimension_numbers<[1], [0], [0], [1], [0, 0, 1, 1], [], []>} : vector<16x8xf32>, vector<8x512xf32>, vector<16x512xf32> -> vector<16x512xf32>
    %3 = vector.extract_strided_slice %2 {offsets = [0, 0], sizes = [8, 512], strides = [1, 1]} : vector<16x512xf32> to vector<8x512xf32>
    %c0_3 = arith.constant 0 : index
    %c0_4 = arith.constant 0 : index
    %4 = vector.load %arg5[%c0_3, %c0_4] : memref<8x8xf32, #tpu.memory_space<vmem>>, vector<8x8xf32>
    %c0_5 = arith.constant 0 : index
    %c0_6 = arith.constant 0 : index
    %5 = vector.load %arg2[%c0_5, %c0_6] : memref<8x512xf32, #tpu.memory_space<vmem>>, vector<8x512xf32>
    %cst_7 = arith.constant dense<0.000000e+00> : vector<8x512xf32>
    %6 = tpu.matmul %4, %5, %cst_7 {dimension_numbers = #tpu.dot_dimension_numbers<[1], [0], [0], [1], [0, 0, 1, 1], [], []>} : vector<8x8xf32>, vector<8x512xf32>, vector<8x512xf32> -> vector<8x512xf32>
    %7 = arith.addf %3, %6 : vector<8x512xf32>
    %c0_8 = arith.constant 0 : index
    %c0_9 = arith.constant 0 : index
    %8 = vector.load %arg7[%c0_8, %c0_9] : memref<8x1xf32, #tpu.memory_space<vmem>>, vector<8x1xf32>
    %9 = vector.broadcast %8 : vector<8x1xf32> to vector<8x512xf32>
    %10 = arith.addf %7, %9 : vector<8x512xf32>
    %11 = vector.extract_strided_slice %2 {offsets = [8, 0], sizes = [8, 512], strides = [1, 1]} : vector<16x512xf32> to vector<8x512xf32>
    %c0_10 = arith.constant 0 : index
    %c0_11 = arith.constant 0 : index
    %12 = vector.load %arg6[%c0_10, %c0_11] : memref<8x4xf32, #tpu.memory_space<vmem>>, vector<8x4xf32>
    %c0_12 = arith.constant 0 : index
    %c0_13 = arith.constant 0 : index
    %13 = vector.load %arg3[%c0_12, %c0_13] : memref<4x512xf32, #tpu.memory_space<vmem>>, vector<4x512xf32>
    %cst_14 = arith.constant dense<0.000000e+00> : vector<8x512xf32>
    %14 = tpu.matmul %12, %13, %cst_14 {dimension_numbers = #tpu.dot_dimension_numbers<[1], [0], [0], [1], [0, 0, 1, 1], [], []>} : vector<8x4xf32>, vector<4x512xf32>, vector<8x512xf32> -> vector<8x512xf32>
    %15 = arith.addf %11, %14 : vector<8x512xf32>
    %c0_15 = arith.constant 0 : index
    %c0_16 = arith.constant 0 : index
    %16 = vector.load %arg8[%c0_15, %c0_16] : memref<8x1xf32, #tpu.memory_space<vmem>>, vector<8x1xf32>
    %17 = vector.broadcast %16 : vector<8x1xf32> to vector<8x512xf32>
    %18 = arith.addf %15, %17 : vector<8x512xf32>
    %c0_17 = arith.constant 0 : index
    %c0_18 = arith.constant 0 : index
    %19 = vector.load %arg9[%c0_17, %c0_18] : memref<8x512xf32, #tpu.memory_space<vmem>>, vector<8x512xf32>
    tpu.vector_store %arg9[%c0_17, %c0_18], %10 {strides = array<i32>} : memref<8x512xf32, #tpu.memory_space<vmem>>, vector<8x512xf32>,
    %c0_19 = arith.constant 0 : index
    %c0_20 = arith.constant 0 : index
    %20 = vector.load %arg10[%c0_19, %c0_20] : memref<8x512xf32, #tpu.memory_space<vmem>>, vector<8x512xf32>
    tpu.vector_store %arg10[%c0_19, %c0_20], %18 {strides = array<i32>} : memref<8x512xf32, #tpu.memory_space<vmem>>, vector<8x512xf32>,
    return
  }
  func.func @transform_0(%arg0: i32) -> (i32, i32) {
    %c0_i32 = arith.constant 0 : i32
    %c0_i32_0 = arith.constant 0 : i32
    return %c0_i32, %arg0 : i32, i32
  }
  func.func @transform_1(%arg0: i32) -> (i32, i32) {
    %c0_i32 = arith.constant 0 : i32
    %c0_i32_0 = arith.constant 0 : i32
    return %c0_i32, %arg0 : i32, i32
  }
  func.func @transform_2(%arg0: i32) -> (i32, i32) {
    %c0_i32 = arith.constant 0 : i32
    %c0_i32_0 = arith.constant 0 : i32
    return %c0_i32, %arg0 : i32, i32
  }
  func.func @transform_3(%arg0: i32) -> (i32, i32) {
    %c0_i32 = arith.constant 0 : i32
    %c0_i32_0 = arith.constant 0 : i32
    %c0_i32_1 = arith.constant 0 : i32
    return %c0_i32, %c0_i32_0 : i32, i32
  }
  func.func @transform_4(%arg0: i32) -> (i32, i32) {
    %c0_i32 = arith.constant 0 : i32
    %c0_i32_0 = arith.constant 0 : i32
    %c0_i32_1 = arith.constant 0 : i32
    return %c0_i32, %c0_i32_0 : i32, i32
  }
  func.func @transform_5(%arg0: i32) -> (i32, i32) {
    %c0_i32 = arith.constant 0 : i32
    %c0_i32_0 = arith.constant 0 : i32
    %c0_i32_1 = arith.constant 0 : i32
    return %c0_i32, %c0_i32_0 : i32, i32
  }
  func.func @transform_6(%arg0: i32) -> (i32, i32) {
    %c0_i32 = arith.constant 0 : i32
    %c0_i32_0 = arith.constant 0 : i32
    %c0_i32_1 = arith.constant 0 : i32
    return %c0_i32, %c0_i32_0 : i32, i32
  }
  func.func @transform_7(%arg0: i32) -> (i32, i32) {
    %c0_i32 = arith.constant 0 : i32
    %c0_i32_0 = arith.constant 0 : i32
    %c0_i32_1 = arith.constant 0 : i32
    return %c0_i32, %c0_i32_0 : i32, i32
  }
  func.func @transform_8(%arg0: i32) -> (i32, i32) {
    %c0_i32 = arith.constant 0 : i32
    %c0_i32_0 = arith.constant 0 : i32
    return %c0_i32, %arg0 : i32, i32
  }
  func.func @transform_9(%arg0: i32) -> (i32, i32) {
    %c0_i32 = arith.constant 0 : i32
    %c0_i32_0 = arith.constant 0 : i32
    return %c0_i32, %arg0 : i32, i32
  }
}

</mosaic_0001>

<bundles_post_ra>
// kernel: ffc_bn_act.4
= control target key start
LH: loop header
LB: loop body
LE: loop exit
PB: predicated region body
PF: predicated region fallthrough
CT: control target
= control target key end

     0   :  { %v194_v3 = vmov 0.0   ;;  %vm25_vm0 = vcmask 64512   ;;  %v195_v7 = vmov 0   ;;  %s240_s0 = inlined_call_operand.vmem [shape: f32[8,512], index: 0, kind: input, shape index: {}]   ;;  %s241_s1 = inlined_call_operand.vmem [shape: f32[4,8], index: 1, kind: input, shape index: {}]   ;;  %s242_s2 = inlined_call_operand.vmem [shape: f32[4,1], index: 2, kind: input, shape index: {}]   ;;  %s243_s3 = inlined_call_operand.vmem [shape: f32[4,512], index: 3, kind: output, shape index: {}]  }
   0x1   :  { %v16_v0 = vld [vmem:[%s240_s0 + $0x8] sm:$0xff]  ;;  %v18_v1 = vld [vmem:[%s240_s0 + $0x18] sm:$0xff]  ;;  %v15_v2 = vld [vmem:[%s240_s0] sm:$0xff]  ;;  %93 = vmatprep.mubr.f32.mxu0 %v194_v3  ;;  %164 = vmatprep.mubr.f32.mxu1 %v194_v3 }
   0x2   :  { %29 = vmatprep.subr.mxu0 %v16_v0  ;;  %100 = vmatprep.subr.mxu1 %v18_v1  ;;  %v17_v4 = vld [vmem:[%s240_s0 + $0x10] sm:$0xff]  ;;  %v14_v5 = vld [vmem:[%s241_s1] sm:$0xf] }
   0x3   :  { %30 = vmatpush1.msra.mxu0 %v15_v2  ;;  %101 = vmatpush1.msra.mxu1 %v17_v4  ;;  %v19_v6 = vld [vmem:[%s242_s2] sm:$0xf] }
   0x4   :  { %189 = vmatmul.mubr.msk.f32.vlgmr.msra.gmra.mrb[0].mxu0 %vm25_vm0, %v14_v5  ;;  %190 = vmatmul.mubr.msk.f32.vlgmr.msra.gmra.mrb[0].mxu1 %vm25_vm0, %v14_v5 }
   0x5   :  { %193 = vset.pattern.permute.xlu0 %v195_v7 }
   0x6   :  { %22 = vperm.xlu0 %193, %v19_v6  }
  0x85   :  { %v23_v8 = vpop.permute.xlu0 %22 }
  0xd7   :  { %v95_v9 = vpop.f32.mrb[0].mxu0  ;;  %v166_v10 = vpop.f32.mrb[0].mxu1 }
  0xd8   :  { %v96_v11 = vadd.f32 %v95_v9, %v23_v8  ;;  %v167_v12 = vadd.f32 %v166_v10, %v23_v8  ;;  %v97_v13 = vpop.f32.mrb[1].mxu0  ;;  %v168_v14 = vpop.f32.mrb[1].mxu1 }
  0xd9   :  { %v98_v15 = vadd.f32 %v97_v13, %v23_v8  ;;  %v169_v16 = vadd.f32 %v168_v14, %v23_v8 }
  0xda   :  { %v171_v17 = vmax.f32 %v96_v11, 0.0  ;;  %v173_v18 = vmax.f32 %v167_v12, 0.0 }
  0xdb   :  { %v172_v19 = vmax.f32 %v98_v15, 0.0  ;;  %v174_v20 = vmax.f32 %v169_v16, 0.0 }
  0xdd   :  { %v179_v21 = vcombine.low %v171_v17, %v172_v19  ;;  %v180_v22 = vcombine.low %v173_v18, %v174_v20 }
  0xdf   :  { %183 = vst [vmem:[%s243_s3] sm:$0xff] %v179_v21  ;;  %184 = vst [vmem:[%s243_s3 + $0x8] sm:$0xff] %v180_v22 }

// kernel: ffc_bn_act.6
= control target key start
LH: loop header
LB: loop body
LE: loop exit
PB: predicated region body
PF: predicated region fallthrough
CT: control target
= control target key end

     0   :  { %vm39_vm0 = vcmask 1043456   ;;  %vm35_vm1 = vcmask 31744   ;;  %v403_v0 = vmov 0.0   ;;  %vm404_vm2 = vmmov 0   ;;  %s498_s1 = inlined_call_operand.vmem [shape: f32[4,128], index: 1, kind: input, shape index: {}]   ;;  %s499_s0 = inlined_call_operand.vmem [shape: f32[4,128], index: 0, kind: input, shape index: {}]   ;;  %s500_s3 = inlined_call_operand.vmem [shape: f32[4,4], index: 3, kind: input, shape index: {}]   ;;  %s501_s2 = inlined_call_operand.vmem [shape: f32[4,4], index: 2, kind: input, shape index: {}]   ;;  %s502_s5 = inlined_call_operand.vmem [shape: f32[4,4], index: 5, kind: input, shape index: {}]   ;;  %s503_s4 = inlined_call_operand.vmem [shape: f32[4,4], index: 4, kind: input, shape index: {}]   ;;  %s504_s6 = inlined_call_operand.vmem [shape: f32[4,1], index: 6, kind: input, shape index: {}]   ;;  %s505_s7 = inlined_call_operand.vmem [shape: f32[4,1], index: 7, kind: input, shape index: {}]   ;;  %s506_s8 = inlined_call_operand.vmem [shape: f32[4,128], index: 8, kind: output, shape index: {0}]   ;;  %s507_s9 = inlined_call_operand.vmem [shape: f32[4,128], index: 9, kind: output, shape index: {1}]  }
   0x1   :  { %379 = vmatprep.subr.mxu0 %v403_v0  ;;  %384 = vmatprep.subr.mxu1 %v403_v0  ;;  %v32_v1 = vld [vmem:[%s498_s1] sm:$0xf]  ;;  %v405_v8 = vmov 0  }
   0x2   :  { %v31_v2 = vld [vmem:[%s499_s0] sm:$0xf]  ;;  %380 = vmatpush3.msk.msra.mxu0 %vm39_vm0, %v32_v1  ;;  %381 = vmatprep.mubr.msk.f32.mxu0 %vm404_vm2, %v403_v0 }
   0x3   :  { %v34_v3 = vld [vmem:[%s500_s3] sm:$0xf]  ;;  %385 = vmatpush3.msk.msra.mxu1 %vm39_vm0, %v31_v2  ;;  %386 = vmatprep.mubr.msk.f32.mxu1 %vm404_vm2, %v403_v0 }
   0x4   :  { %v33_v4 = vld [vmem:[%s501_s2] sm:$0xf]  ;;  %382 = vmatmul.mubr.msk.f32.vlgmr.msra.gmra.mrb[0].mxu0 %vm35_vm1, %v34_v3  ;;  %389 = vmatprep.subr.mxu0 %v403_v0 }
   0x5   :  { %387 = vmatmul.mubr.msk.f32.vlgmr.msra.gmra.mrb[0].mxu1 %vm35_vm1, %v33_v4  ;;  %394 = vmatprep.subr.mxu1 %v403_v0  ;;  %v190_v5 = vld [vmem:[%s502_s5] sm:$0xf] }
   0x6   :  { %v189_v6 = vld [vmem:[%s503_s4] sm:$0xf]  ;;  %390 = vmatpush3.msk.msra.mxu0 %vm39_vm0, %v32_v1  ;;  %395 = vmatpush3.msk.msra.mxu1 %vm39_vm0, %v31_v2 }
   0x7   :  { %391 = vmatprep.mubr.msk.f32.mxu0 %vm404_vm2, %v403_v0  ;;  %396 = vmatprep.mubr.msk.f32.mxu1 %vm404_vm2, %v403_v0  ;;  %v337_v7 = vld [vmem:[%s504_s6] sm:$0xf] }
   0x8   :  { %392 = vmatmul.mubr.msk.f32.vlgmr.msra.gmra.mrb[2].mxu0 %vm35_vm1, %v190_v5  ;;  %402 = vset.pattern.permute.xlu0 %v405_v8  ;;  %v346_v9 = vld [vmem:[%s505_s7] sm:$0xf] }
   0x9   :  { %397 = vmatmul.mubr.msk.f32.vlgmr.msra.gmra.mrb[2].mxu1 %vm35_vm1, %v189_v6  ;;  %340 = vperm.xlu0 %402, %v337_v7  }
   0xd   :  { %349 = vperm.xlu0 %402, %v346_v9  }
  0x88   :  { %v341_v10 = vpop.permute.xlu0 %340 }
  0x8c   :  { %v350_v23 = vpop.permute.xlu0 %349 }
  0xd7   :  { %v109_v11 = vpop.f32.mrb[0].mxu0 }
  0xd8   :  { %v185_v12 = vpop.f32.mrb[0].mxu1  ;;  %v383_v14 = vpop.f32.mrb[1].mxu0 }
  0xd9   :  { %v186_v13 = vadd.f32 %v185_v12, %v109_v11  ;;  %v388_v15 = vpop.f32.mrb[1].mxu1 }
  0xdb   :  { %v343_v16 = vadd.f32 %v341_v10, %v186_v13  ;;  %v260_v17 = vpop.f32.mrb[2].mxu0 }
  0xdc   :  { %v333_v18 = vpop.f32.mrb[2].mxu1  ;;  %v393_v21 = vpop.f32.mrb[3].mxu0 }
  0xdd   :  { %v344_v19 = vmax.f32 %v343_v16, 0.0  ;;  %v334_v20 = vadd.f32 %v333_v18, %v260_v17  ;;  %v398_v22 = vpop.f32.mrb[3].mxu1 }
  0xdf   :  { %345 = vst [vmem:[%s506_s8] sm:$0xf] %v344_v19  ;;  %v352_v24 = vadd.f32 %v350_v23, %v334_v20 }
  0xe1   :  { %v353_v25 = vmax.f32 %v352_v24, 0.0 }
  0xe3   :  { %354 = vst [vmem:[%s507_s9] sm:$0xf] %v353_v25 }

// kernel: reverse.1
= control target key start
LH: loop header
LB: loop body
LE: loop exit
PB: predicated region body
PF: predicated region fallthrough
CT: control target
= control target key end

     0   :  { %v79_v8 = vld [vmem:[#allocation1 + $0x38] sm:$0xf]  ;;  %v89_v9 = vld [vmem:[#allocation1 + $0x30] sm:$0xf]  ;;  %v99_v10 = vld [vmem:[#allocation1 + $0x28] sm:$0xf]  ;;  %v156_v12 = vlaneseq  ;;  %s487_s0 = inlined_call_operand.vmem [shape: f32[4,2,8,3], index: 0, kind: input, shape index: {}]   ;;  %s488_s1 = inlined_call_operand.vmem [shape: f32[4,2,8,3], index: 1, kind: output, shape index: {}]  }
   0x1   :  { %v18_v0 = vld [vmem:[%s487_s0] sm:$0xf]  ;;  %v20_v1 = vld [vmem:[%s487_s0 + $0x4] sm:$0xf]  ;;  %v22_v2 = vld [vmem:[%s487_s0 + $0x8] sm:$0xf] }
   0x2   :  { %19 = vst [vmem:[#allocation1 + $0x4] sm:$0xf] %v18_v0  ;;  %21 = vst [vmem:[#allocation1 + $0xc] sm:$0xf] %v20_v1  ;;  %v24_v3 = vld [vmem:[%s487_s0 + $0xc] sm:$0xf] }
   0x3   :  { %23 = vst [vmem:[#allocation1 + $0x14] sm:$0xf] %v22_v2  ;;  %v26_v4 = vld [vmem:[%s487_s0 + $0x10] sm:$0xf]  ;;  %v28_v5 = vld [vmem:[%s487_s0 + $0x14] sm:$0xf] }
   0x4   :  { %25 = vst [vmem:[#allocation1 + $0x1c] sm:$0xf] %v24_v3  ;;  %27 = vst [vmem:[#allocation1 + $0x24] sm:$0xf] %v26_v4  ;;  %v30_v6 = vld [vmem:[%s487_s0 + $0x18] sm:$0xf] }
   0x5   :  { %29 = vst [vmem:[#allocation1 + $0x2c] sm:$0xf] %v28_v5  ;;  %v32_v7 = vld [vmem:[%s487_s0 + $0x1c] sm:$0xf]  ;;  %31 = vst [vmem:[#allocation1 + $0x34] sm:$0xf] %v30_v6 }
   0x6   :  { %33 = vst [vmem:[#allocation1 + $0x3c] sm:$0xf] %v32_v7  ;;  %81 = vst [vmem:[#allocation0 + $0x70] sm:$0xf] %v79_v8  ;;  %v109_v11 = vld [vmem:[#allocation1 + $0x20] sm:$0xf] }
   0x7   :  { %91 = vst [vmem:[#allocation0 + $0x60] sm:$0xf] %v89_v9  ;;  %101 = vst [vmem:[#allocation0 + $0x50] sm:$0xf] %v99_v10  ;;  %v119_v13 = vld [vmem:[#allocation1 + $0x18] sm:$0xf] }
   0x8   :  { %111 = vst [vmem:[#allocation0 + $0x40] sm:$0xf] %v109_v11  ;;  %v129_v14 = vld [vmem:[#allocation1 + $0x10] sm:$0xf]  ;;  %v139_v15 = vld [vmem:[#allocation1 + $0x8] sm:$0xf] }
   0x9   :  { %121 = vst [vmem:[#allocation0 + $0x30] sm:$0xf] %v119_v13  ;;  %131 = vst [vmem:[#allocation0 + $0x20] sm:$0xf] %v129_v14  ;;  %v146_v16 = vld [vmem:[#allocation1] sm:$0xf] }
   0xa   :  { %141 = vst [vmem:[#allocation0 + $0x10] sm:$0xf] %v139_v15  ;;  %147 = vst [vmem:[#allocation0] sm:$0xf] %v146_v16  ;;  %v456_v17 = vshrl.u32 %v156_v12, 7 }
   0xb   :  { %v124_v18 = vld [vmem:[#allocation1 + $0x14] sm:$0xf]  ;;  %v134_v19 = vld [vmem:[#allocation1 + $0xc] sm:$0xf]  ;;  %v143_v20 = vld [vmem:[#allocation1 + $0x4] sm:$0xf] }
   0xc   :  { %v94_v21 = vld [vmem:[#allocation1 + $0x2c] sm:$0xf]  ;;  %v104_v22 = vld [vmem:[#allocation1 + $0x24] sm:$0xf]  ;;  %v114_v23 = vld [vmem:[#allocation1 + $0x1c] sm:$0xf] }
   0xd   :  { %126 = vst [vmem:[#allocation0 + $0x28] sm:$0xf] %v124_v18  ;;  %136 = vst [vmem:[#allocation0 + $0x18] sm:$0xf] %v134_v19  ;;  %v74_v24 = vld [vmem:[#allocation1 + $0x3c] sm:$0xf] }
   0xe   :  { %145 = vst [vmem:[#allocation0 + $0x8] sm:$0xf] %v143_v20  ;;  %v84_v25 = vld [vmem:[#allocation1 + $0x34] sm:$0xf]  ;;  %96 = vst [vmem:[#allocation0 + $0x58] sm:$0xf] %v94_v21 }
   0xf   :  { %106 = vst [vmem:[#allocation0 + $0x48] sm:$0xf] %v104_v22  ;;  %116 = vst [vmem:[#allocation0 + $0x38] sm:$0xf] %v114_v23  ;;  %v247_v26 = vld [vmem:[#allocation0 + $0x77] ss:$-1 sm:$0xff] }
  0x10   :  { %76 = vst [vmem:[#allocation0 + $0x78] sm:$0xf] %v74_v24  ;;  %86 = vst [vmem:[#allocation0 + $0x68] sm:$0xf] %v84_v25  ;;  %v205_v27 = vld [vmem:[#allocation0 + $0x47] ss:$-1 sm:$0xff] }
  0x11   :  { %v219_v28 = vld [vmem:[#allocation0 + $0x57] ss:$-1 sm:$0xff]  ;;  %v233_v29 = vld [vmem:[#allocation0 + $0x67] ss:$-1 sm:$0xff]  ;;  %v206_v37 = vrot.slane %v205_v27, 5  ;;  %v248_v41 = vrot.slane %v247_v26, 5 }
  0x12   :  { %v163_v30 = vld [vmem:[#allocation0 + $0x17] ss:$-1 sm:$0xff]  ;;  %v177_v31 = vld [vmem:[#allocation0 + $0x27] ss:$-1 sm:$0xff]  ;;  %v220_v39 = vrot.slane %v219_v28, 5  ;;  %v234_v40 = vrot.slane %v233_v29, 5 }
  0x13   :  { %v191_v32 = vld [vmem:[#allocation0 + $0x37] ss:$-1 sm:$0xff]  ;;  %v149_v33 = vld [vmem:[#allocation0 + $0x7] ss:$-1 sm:$0xff]  ;;  %v164_v34 = vrot.slane %v163_v30, 5  ;;  %v178_v35 = vrot.slane %v177_v31, 5 }
  0x14   :  { %v192_v36 = vrot.slane %v191_v32, 5  ;;  %v150_v38 = vrot.slane %v149_v33, 5  ;;  %vm158_vm0 = vcmp.lt.s32.totalorder %v456_v17, 3  ;;  %207 = vst [vmem:[#allocation2 + $0x20] sm:$0xff] %v206_v37  ;;  %v168_v43 = vld [vmem:[#allocation0 + $0x1f] ss:$-1 sm:$0xff] }
  0x15   :  { %165 = vst [vmem:[#allocation2 + $0x8] sm:$0xff] %v164_v34  ;;  %179 = vst [vmem:[#allocation2 + $0x10] sm:$0xff] %v178_v35  ;;  %v154_v42 = vld [vmem:[#allocation0 + $0xf] ss:$-1 sm:$0xff]  ;;  %v169_v46 = vrot.slane %v168_v43, 5 }
  0x16   :  { %193 = vst [vmem:[#allocation2 + $0x18] sm:$0xff] %v192_v36  ;;  %151 = vst [vmem:[#allocation2] sm:$0xff] %v150_v38  ;;  %v182_v44 = vld [vmem:[#allocation0 + $0x2f] ss:$-1 sm:$0xff]  ;;  %v155_v45 = vrot.slane %v154_v42, 5 }
  0x17   :  { %221 = vst [vmem:[#allocation2 + $0x28] sm:$0xff] %v220_v39  ;;  %235 = vst [vmem:[#allocation2 + $0x30] sm:$0xff] %v234_v40  ;;  %v183_v47 = vrot.slane %v182_v44, 5  ;;  %v196_v48 = vld [vmem:[#allocation0 + $0x3f] ss:$-1 sm:$0xff] }
  0x18   :  { %249 = vst [vmem:[#allocation2 + $0x38] sm:$0xff] %v248_v41  ;;  %v197_v49 = vrot.slane %v196_v48, 5  ;;  %v210_v50 = vld [vmem:[#allocation0 + $0x4f] ss:$-1 sm:$0xff]  ;;  %v224_v51 = vld [vmem:[#allocation0 + $0x5f] ss:$-1 sm:$0xff] }
  0x19   :  { %159 = vst.msk [vmem:[#allocation2] sm:$0xff] %vm158_vm0, %v155_v45  ;;  %173 = vst.msk [vmem:[#allocation2 + $0x8] sm:$0xff] %vm158_vm0, %v169_v46  ;;  %v211_v52 = vrot.slane %v210_v50, 5  ;;  %v225_v53 = vrot.slane %v224_v51, 5  ;;  %v238_v54 = vld [vmem:[#allocation0 + $0x6f] ss:$-1 sm:$0xff] }
  0x1a   :  { %187 = vst.msk [vmem:[#allocation2 + $0x10] sm:$0xff] %vm158_vm0, %v183_v47  ;;  %v252_v55 = vld [vmem:[#allocation0 + $0x7f] ss:$-1 sm:$0xff]  ;;  %201 = vst.msk [vmem:[#allocation2 + $0x18] sm:$0xff] %vm158_vm0, %v197_v49  ;;  %v239_v56 = vrot.slane %v238_v54, 5 }
  0x1b   :  { %v253_v57 = vrot.slane %v252_v55, 5  ;;  %215 = vst.msk [vmem:[#allocation2 + $0x20] sm:$0xff] %vm158_vm0, %v211_v52  ;;  %229 = vst.msk [vmem:[#allocation2 + $0x28] sm:$0xff] %vm158_vm0, %v225_v53 }
  0x1c   :  { %243 = vst.msk [vmem:[#allocation2 + $0x30] sm:$0xff] %vm158_vm0, %v239_v56 }
  0x1d   :  { %257 = vst.msk [vmem:[#allocation2 + $0x38] sm:$0xff] %vm158_vm0, %v253_v57 }
  0x20   :  { %v261_v58 = vld [vmem:[#allocation2] sm:$0xf]  ;;  %v265_v59 = vld [vmem:[#allocation2 + $0x8] sm:$0xf] }
  0x21   :  { %v270_v60 = vld [vmem:[#allocation2 + $0x10] sm:$0xf]  ;;  %263 = vst [vmem:[#allocation3] sm:$0xf] %v261_v58  ;;  %268 = vst [vmem:[#allocation3 + $0x4] sm:$0xf] %v265_v59 }
  0x22   :  { %274 = vst [vmem:[#allocation3 + $0x8] sm:$0xf] %v270_v60  ;;  %v276_v61 = vld [vmem:[#allocation2 + $0x18] sm:$0xf]  ;;  %v282_v62 = vld [vmem:[#allocation2 + $0x20] sm:$0xf] }
  0x23   :  { %280 = vst [vmem:[#allocation3 + $0xc] sm:$0xf] %v276_v61  ;;  %v288_v63 = vld [vmem:[#allocation2 + $0x28] sm:$0xf]  ;;  %286 = vst [vmem:[#allocation3 + $0x10] sm:$0xf] %v282_v62 }
  0x24   :  { %292 = vst [vmem:[#allocation3 + $0x14] sm:$0xf] %v288_v63  ;;  %v294_v0 = vld [vmem:[#allocation2 + $0x30] sm:$0xf]  ;;  %v300_v1 = vld [vmem:[#allocation2 + $0x38] sm:$0xf] }
  0x25   :  { %298 = vst [vmem:[#allocation3 + $0x18] sm:$0xf] %v294_v0  ;;  %304 = vst [vmem:[#allocation3 + $0x1c] sm:$0xf] %v300_v1 }
  0x28   :  { %v320_v2 = vld [vmem:[#allocation3] sm:$0xff]  }
  0x29   :  { %321 = vst [vmem:[%s488_s1] sm:$0xff] %v320_v2  }
  0x2a   :  { %v324_v3 = vld [vmem:[#allocation3 + $0x8] sm:$0xff]  }
  0x2b   :  { %325 = vst [vmem:[%s488_s1 + $0x8] sm:$0xff] %v324_v3   ;;  %v328_v4 = vld [vmem:[#allocation3 + $0x10] sm:$0xff]  }
  0x2c   :  { %329 = vst [vmem:[%s488_s1 + $0x10] sm:$0xff] %v328_v4   ;;  %v332_v5 = vld [vmem:[#allocation3 + $0x18] sm:$0xff]  }
  0x2d   :  { %333 = vst [vmem:[%s488_s1 + $0x18] sm:$0xff] %v332_v5  }

// kernel: tile.9
= control target key start
LH: loop header
LB: loop body
LE: loop exit
PB: predicated region body
PF: predicated region fallthrough
CT: control target
= control target key end

     0   :  { %vm642_vm0 = vcmask 1047556   ;;  %s1240_s10 = smov 8   ;;  %vm644_vm1 = vcmask 64512   ;;  %vm789_vm2 = vcmask 130112   ;;  %s1811_s0 = inlined_call_operand.vmem [shape: f32[4,2,2,8,2,8], index: 0, kind: input, shape index: {}]   ;;  %s1812_s1 = inlined_call_operand.vmem [shape: f32[4,2,16,16], index: 1, kind: output, shape index: {}]  }
   0x1   :  { %v1202_v0 = vld [vmem:[%s1811_s0 + $0xe] sm:$0x3]  ;;  %v1203_v1 = vld [vmem:[%s1811_s0 + $0xc] sm:$0x3]  ;;  %v1204_v2 = vld [vmem:[%s1811_s0 + $0xa] sm:$0x3] }
   0x2   :  { %608 = vst [vmem:[#allocation0 + $0x38] sm:$0x3] %v1202_v0  ;;  %613 = vst [vmem:[#allocation0 + $0x30] sm:$0x3] %v1203_v1  ;;  %v1205_v3 = vld [vmem:[%s1811_s0 + $0x8] sm:$0x3] }
   0x3   :  { %618 = vst [vmem:[#allocation0 + $0x28] sm:$0x3] %v1204_v2  ;;  %v1206_v4 = vld [vmem:[%s1811_s0 + $0x6] sm:$0x3]  ;;  %v1207_v5 = vld [vmem:[%s1811_s0 + $0x4] sm:$0x3] }
   0x4   :  { %623 = vst [vmem:[#allocation0 + $0x20] sm:$0x3] %v1205_v3  ;;  %628 = vst [vmem:[#allocation0 + $0x18] sm:$0x3] %v1206_v4  ;;  %v1208_v6 = vld [vmem:[%s1811_s0 + $0x2] sm:$0x3] }
   0x5   :  { %633 = vst [vmem:[#allocation0 + $0x10] sm:$0x3] %v1207_v5  ;;  %v638_v7 = vld [vmem:[%s1811_s0] sm:$0x3]  ;;  %637 = vst [vmem:[#allocation0 + $0x8] sm:$0x3] %v1208_v6 }
   0x6   :  { %639 = vst [vmem:[#allocation0] sm:$0x3] %v638_v7  ;;  %v1138_v8 = vld [vmem:[%s1811_s0 + $0x8e] sm:$0x3]  ;;  %v1139_v9 = vld [vmem:[%s1811_s0 + $0x8c] sm:$0x3] }
   0x7   :  { %v1140_v10 = vld [vmem:[%s1811_s0 + $0x8a] sm:$0x3]  ;;  %288 = vst [vmem:[#allocation0 + $0x238] sm:$0x3] %v1138_v8  ;;  %293 = vst [vmem:[#allocation0 + $0x230] sm:$0x3] %v1139_v9 }
   0x8   :  { %298 = vst [vmem:[#allocation0 + $0x228] sm:$0x3] %v1140_v10  ;;  %v1141_v11 = vld [vmem:[%s1811_s0 + $0x88] sm:$0x3]  ;;  %v1142_v12 = vld [vmem:[%s1811_s0 + $0x86] sm:$0x3] }
   0x9   :  { %v1143_v13 = vld [vmem:[%s1811_s0 + $0x84] sm:$0x3]  ;;  %303 = vst [vmem:[#allocation0 + $0x220] sm:$0x3] %v1141_v11  ;;  %308 = vst [vmem:[#allocation0 + $0x218] sm:$0x3] %v1142_v12 }
   0xa   :  { %313 = vst [vmem:[#allocation0 + $0x210] sm:$0x3] %v1143_v13  ;;  %v1144_v14 = vld [vmem:[%s1811_s0 + $0x82] sm:$0x3]  ;;  %v1145_v15 = vld [vmem:[%s1811_s0 + $0x80] sm:$0x3] }
   0xb   :  { %v1170_v16 = vld [vmem:[%s1811_s0 + $0x4e] sm:$0x3]  ;;  %318 = vst [vmem:[#allocation0 + $0x208] sm:$0x3] %v1144_v14  ;;  %323 = vst [vmem:[#allocation0 + $0x200] sm:$0x3] %v1145_v15 }
   0xc   :  { %448 = vst [vmem:[#allocation0 + $0x138] sm:$0x3] %v1170_v16  ;;  %v1171_v17 = vld [vmem:[%s1811_s0 + $0x4c] sm:$0x3]  ;;  %v1172_v18 = vld [vmem:[%s1811_s0 + $0x4a] sm:$0x3] }
   0xd   :  { %v1173_v19 = vld [vmem:[%s1811_s0 + $0x48] sm:$0x3]  ;;  %453 = vst [vmem:[#allocation0 + $0x130] sm:$0x3] %v1171_v17  ;;  %458 = vst [vmem:[#allocation0 + $0x128] sm:$0x3] %v1172_v18 }
   0xe   :  { %463 = vst [vmem:[#allocation0 + $0x120] sm:$0x3] %v1173_v19  ;;  %v1174_v20 = vld [vmem:[%s1811_s0 + $0x46] sm:$0x3]  ;;  %v1175_v21 = vld [vmem:[%s1811_s0 + $0x44] sm:$0x3] }
   0xf   :  { %v1176_v22 = vld [vmem:[%s1811_s0 + $0x42] sm:$0x3]  ;;  %468 = vst [vmem:[#allocation0 + $0x118] sm:$0x3] %v1174_v20  ;;  %473 = vst [vmem:[#allocation0 + $0x110] sm:$0x3] %v1175_v21 }
  0x10   :  { %478 = vst [vmem:[#allocation0 + $0x108] sm:$0x3] %v1176_v22  ;;  %v1177_v23 = vld [vmem:[%s1811_s0 + $0x40] sm:$0x3]  ;;  %v1106_v24 = vld [vmem:[%s1811_s0 + $0xce] sm:$0x3] }
  0x11   :  { %v1107_v25 = vld [vmem:[%s1811_s0 + $0xcc] sm:$0x3]  ;;  %v784_v26 = vld [vmem:[#allocation0 + $0x1] ss:$8 sm:$0xf0]  }
  0x12   :  { %483 = vst [vmem:[#allocation0 + $0x100] sm:$0x3] %v1177_v23  ;;  %128 = vst [vmem:[#allocation0 + $0x338] sm:$0x3] %v1106_v24  ;;  %v1108_v27 = vld [vmem:[%s1811_s0 + $0xca] sm:$0x3] }
  0x13   :  { %133 = vst [vmem:[#allocation0 + $0x330] sm:$0x3] %v1107_v25  ;;  %v782_v28 = vld [vmem:[#allocation0 + $0x1] ss:$8 sm:$0xf]  }
  0x14   :  { %138 = vst [vmem:[#allocation0 + $0x328] sm:$0x3] %v1108_v27  ;;  %v1109_v29 = vld [vmem:[%s1811_s0 + $0xc8] sm:$0x3]  ;;  %v786_v30 = vsel %vm642_vm0, %v784_v26, %v782_v28  ;;  %v1110_v31 = vld [vmem:[%s1811_s0 + $0xc6] sm:$0x3] }
  0x15   :  { %143 = vst [vmem:[#allocation0 + $0x320] sm:$0x3] %v1109_v29  ;;  %v1111_v32 = vld [vmem:[%s1811_s0 + $0xc4] sm:$0x3]  ;;  %v1112_v33 = vld [vmem:[%s1811_s0 + $0xc2] sm:$0x3]  ;;  %787 = vrot.lane.b32.xlu0 %v786_v30, %s1240_s10 }
  0x16   :  { %v805_v34 = vld [vmem:[#allocation0 + $0x201] ss:$8 sm:$0xf0]   ;;  %148 = vst [vmem:[#allocation0 + $0x318] sm:$0x3] %v1110_v31 }
  0x17   :  { %153 = vst [vmem:[#allocation0 + $0x310] sm:$0x3] %v1111_v32  ;;  %158 = vst [vmem:[#allocation0 + $0x308] sm:$0x3] %v1112_v33  ;;  %v1113_v35 = vld [vmem:[%s1811_s0 + $0xc0] sm:$0x3] }
  0x18   :  { %v803_v36 = vld [vmem:[#allocation0 + $0x201] ss:$8 sm:$0xf]   ;;  %163 = vst [vmem:[#allocation0 + $0x300] sm:$0x3] %v1113_v35 }
  0x19   :  { %v1194_v37 = vld [vmem:[%s1811_s0 + $0x1e] sm:$0x3]  ;;  %v807_v38 = vsel %vm642_vm0, %v805_v34, %v803_v36  ;;  %v794_v39 = vld [vmem:[#allocation0 + $0x101] ss:$8 sm:$0xf0]  }
  0x1a   :  { %568 = vst [vmem:[#allocation0 + $0x78] sm:$0x3] %v1194_v37  ;;  %v1195_v40 = vld [vmem:[%s1811_s0 + $0x1c] sm:$0x3]  ;;  %808 = vrot.lane.b32.xlu1 %v807_v38, %s1240_s10  ;;  %v1196_v41 = vld [vmem:[%s1811_s0 + $0x1a] sm:$0x3] }
  0x1b   :  { %573 = vst [vmem:[#allocation0 + $0x70] sm:$0x3] %v1195_v40  ;;  %v1197_v42 = vld [vmem:[%s1811_s0 + $0x18] sm:$0x3]  ;;  %v1198_v43 = vld [vmem:[%s1811_s0 + $0x16] sm:$0x3] }
  0x1c   :  { %v792_v44 = vld [vmem:[#allocation0 + $0x101] ss:$8 sm:$0xf]   ;;  %578 = vst [vmem:[#allocation0 + $0x68] sm:$0x3] %v1196_v41 }
  0x1d   :  { %583 = vst [vmem:[#allocation0 + $0x60] sm:$0x3] %v1197_v42  ;;  %588 = vst [vmem:[#allocation0 + $0x58] sm:$0x3] %v1198_v43  ;;  %v1199_v45 = vld [vmem:[%s1811_s0 + $0x14] sm:$0x3]  ;;  %v796_v46 = vsel %vm642_vm0, %v794_v39, %v792_v44 }
  0x1e   :  { %593 = vst [vmem:[#allocation0 + $0x50] sm:$0x3] %v1199_v45  ;;  %v1200_v47 = vld [vmem:[%s1811_s0 + $0x12] sm:$0x3]  ;;  %v1201_v48 = vld [vmem:[%s1811_s0 + $0x10] sm:$0x3]  ;;  %797 = vrot.lane.b32.xlu0 %v796_v46, %s1240_s10 }
  0x1f   :  { %v1162_v49 = vld [vmem:[%s1811_s0 + $0x5e] sm:$0x3]  ;;  %v816_v50 = vld [vmem:[#allocation0 + $0x301] ss:$8 sm:$0xf0]  }
  0x20   :  { %598 = vst [vmem:[#allocation0 + $0x48] sm:$0x3] %v1200_v47  ;;  %603 = vst [vmem:[#allocation0 + $0x40] sm:$0x3] %v1201_v48  ;;  %v1163_v51 = vld [vmem:[%s1811_s0 + $0x5c] sm:$0x3] }
  0x21   :  { %408 = vst [vmem:[#allocation0 + $0x178] sm:$0x3] %v1162_v49  ;;  %413 = vst [vmem:[#allocation0 + $0x170] sm:$0x3] %v1163_v51  ;;  %v1164_v52 = vld [vmem:[%s1811_s0 + $0x5a] sm:$0x3] }
  0x22   :  { %v1165_v53 = vld [vmem:[%s1811_s0 + $0x58] sm:$0x3]  ;;  %v1166_v54 = vld [vmem:[%s1811_s0 + $0x56] sm:$0x3]  ;;  %418 = vst [vmem:[#allocation0 + $0x168] sm:$0x3] %v1164_v52 }
  0x23   :  { %v814_v55 = vld [vmem:[#allocation0 + $0x301] ss:$8 sm:$0xf]   ;;  %423 = vst [vmem:[#allocation0 + $0x160] sm:$0x3] %v1165_v53 }
  0x24   :  { %428 = vst [vmem:[#allocation0 + $0x158] sm:$0x3] %v1166_v54  ;;  %v1167_v56 = vld [vmem:[%s1811_s0 + $0x54] sm:$0x3]  ;;  %v818_v57 = vsel %vm642_vm0, %v816_v50, %v814_v55  ;;  %v1168_v58 = vld [vmem:[%s1811_s0 + $0x52] sm:$0x3] }
  0x25   :  { %433 = vst [vmem:[#allocation0 + $0x150] sm:$0x3] %v1167_v56  ;;  %v1169_v59 = vld [vmem:[%s1811_s0 + $0x50] sm:$0x3]  ;;  %v1130_v60 = vld [vmem:[%s1811_s0 + $0x9e] sm:$0x3]  ;;  %819 = vrot.lane.b32.xlu1 %v818_v57, %s1240_s10 }
  0x26   :  { %438 = vst [vmem:[#allocation0 + $0x148] sm:$0x3] %v1168_v58  ;;  %443 = vst [vmem:[#allocation0 + $0x140] sm:$0x3] %v1169_v59  ;;  %v1131_v61 = vld [vmem:[%s1811_s0 + $0x9c] sm:$0x3] }
  0x27   :  { %248 = vst [vmem:[#allocation0 + $0x278] sm:$0x3] %v1130_v60  ;;  %v1132_v62 = vld [vmem:[%s1811_s0 + $0x9a] sm:$0x3]  ;;  %v1133_v63 = vld [vmem:[%s1811_s0 + $0x98] sm:$0x3] }
  0x28   :  { %v827_v0 = vld [vmem:[#allocation0 + $0x41] ss:$8 sm:$0xf0]   ;;  %253 = vst [vmem:[#allocation0 + $0x270] sm:$0x3] %v1131_v61 }
  0x29   :  { %258 = vst [vmem:[#allocation0 + $0x268] sm:$0x3] %v1132_v62  ;;  %263 = vst [vmem:[#allocation0 + $0x260] sm:$0x3] %v1133_v63  ;;  %v1134_v1 = vld [vmem:[%s1811_s0 + $0x96] sm:$0x3] }
  0x2a   :  { %268 = vst [vmem:[#allocation0 + $0x258] sm:$0x3] %v1134_v1  ;;  %v1135_v2 = vld [vmem:[%s1811_s0 + $0x94] sm:$0x3]  ;;  %v1136_v3 = vld [vmem:[%s1811_s0 + $0x92] sm:$0x3] }
  0x2b   :  { %v1137_v4 = vld [vmem:[%s1811_s0 + $0x90] sm:$0x3]  ;;  %273 = vst [vmem:[#allocation0 + $0x250] sm:$0x3] %v1135_v2  ;;  %278 = vst [vmem:[#allocation0 + $0x248] sm:$0x3] %v1136_v3 }
  0x2c   :  { %v825_v5 = vld [vmem:[#allocation0 + $0x41] ss:$8 sm:$0xf]   ;;  %283 = vst [vmem:[#allocation0 + $0x240] sm:$0x3] %v1137_v4 }
  0x2d   :  { %v1098_v6 = vld [vmem:[%s1811_s0 + $0xde] sm:$0x3]  ;;  %v829_v7 = vsel %vm642_vm0, %v827_v0, %v825_v5  ;;  %v1099_v8 = vld [vmem:[%s1811_s0 + $0xdc] sm:$0x3]  ;;  %v1100_v9 = vld [vmem:[%s1811_s0 + $0xda] sm:$0x3] }
  0x2e   :  { %88 = vst [vmem:[#allocation0 + $0x378] sm:$0x3] %v1098_v6  ;;  %v1101_v10 = vld [vmem:[%s1811_s0 + $0xd8] sm:$0x3]  ;;  %830 = vrot.lane.b32.xlu0 %v829_v7, %s1240_s10  ;;  %93 = vst [vmem:[#allocation0 + $0x370] sm:$0x3] %v1099_v8 }
  0x2f   :  { %v838_v11 = vld [vmem:[#allocation0 + $0x141] ss:$8 sm:$0xf0]   ;;  %98 = vst [vmem:[#allocation0 + $0x368] sm:$0x3] %v1100_v9 }
  0x30   :  { %103 = vst [vmem:[#allocation0 + $0x360] sm:$0x3] %v1101_v10  ;;  %v1102_v12 = vld [vmem:[%s1811_s0 + $0xd6] sm:$0x3]  ;;  %v1103_v13 = vld [vmem:[%s1811_s0 + $0xd4] sm:$0x3] }
  0x31   :  { %108 = vst [vmem:[#allocation0 + $0x358] sm:$0x3] %v1102_v12  ;;  %v1104_v14 = vld [vmem:[%s1811_s0 + $0xd2] sm:$0x3]  ;;  %v1105_v15 = vld [vmem:[%s1811_s0 + $0xd0] sm:$0x3] }
  0x32   :  { %v836_v16 = vld [vmem:[#allocation0 + $0x141] ss:$8 sm:$0xf]   ;;  %113 = vst [vmem:[#allocation0 + $0x350] sm:$0x3] %v1103_v13 }
  0x33   :  { %118 = vst [vmem:[#allocation0 + $0x348] sm:$0x3] %v1104_v14  ;;  %123 = vst [vmem:[#allocation0 + $0x340] sm:$0x3] %v1105_v15  ;;  %v1186_v17 = vld [vmem:[%s1811_s0 + $0x2e] sm:$0x3]  ;;  %v840_v18 = vsel %vm642_vm0, %v838_v11, %v836_v16 }
  0x34   :  { %v849_v19 = vld [vmem:[#allocation0 + $0x241] ss:$8 sm:$0xf0]   ;;  %528 = vst [vmem:[#allocation0 + $0xb8] sm:$0x3] %v1186_v17  ;;  %841 = vrot.lane.b32.xlu1 %v840_v18, %s1240_s10 }
  0x35   :  { %v1187_v20 = vld [vmem:[%s1811_s0 + $0x2c] sm:$0x3]  ;;  %v1188_v21 = vld [vmem:[%s1811_s0 + $0x2a] sm:$0x3]  ;;  %v1189_v22 = vld [vmem:[%s1811_s0 + $0x28] sm:$0x3] }
  0x36   :  { %533 = vst [vmem:[#allocation0 + $0xb0] sm:$0x3] %v1187_v20  ;;  %v1190_v23 = vld [vmem:[%s1811_s0 + $0x26] sm:$0x3]  ;;  %538 = vst [vmem:[#allocation0 + $0xa8] sm:$0x3] %v1188_v21 }
  0x37   :  { %v847_v24 = vld [vmem:[#allocation0 + $0x241] ss:$8 sm:$0xf]   ;;  %543 = vst [vmem:[#allocation0 + $0xa0] sm:$0x3] %v1189_v22 }
  0x38   :  { %548 = vst [vmem:[#allocation0 + $0x98] sm:$0x3] %v1190_v23  ;;  %v1191_v25 = vld [vmem:[%s1811_s0 + $0x24] sm:$0x3]  ;;  %v851_v26 = vsel %vm642_vm0, %v849_v19, %v847_v24  ;;  %v1192_v27 = vld [vmem:[%s1811_s0 + $0x22] sm:$0x3] }
  0x39   :  { %553 = vst [vmem:[#allocation0 + $0x90] sm:$0x3] %v1191_v25  ;;  %v1193_v28 = vld [vmem:[%s1811_s0 + $0x20] sm:$0x3]  ;;  %v1154_v29 = vld [vmem:[%s1811_s0 + $0x6e] sm:$0x3]  ;;  %852 = vrot.lane.b32.xlu0 %v851_v26, %s1240_s10 }
  0x3a   :  { %v860_v30 = vld [vmem:[#allocation0 + $0x341] ss:$8 sm:$0xf0]   ;;  %558 = vst [vmem:[#allocation0 + $0x88] sm:$0x3] %v1192_v27 }
  0x3b   :  { %563 = vst [vmem:[#allocation0 + $0x80] sm:$0x3] %v1193_v28  ;;  %368 = vst [vmem:[#allocation0 + $0x1b8] sm:$0x3] %v1154_v29  ;;  %v1155_v31 = vld [vmem:[%s1811_s0 + $0x6c] sm:$0x3] }
  0x3c   :  { %373 = vst [vmem:[#allocation0 + $0x1b0] sm:$0x3] %v1155_v31  ;;  %v1156_v32 = vld [vmem:[%s1811_s0 + $0x6a] sm:$0x3]  ;;  %v1157_v33 = vld [vmem:[%s1811_s0 + $0x68] sm:$0x3] }
  0x3d   :  { %v1158_v34 = vld [vmem:[%s1811_s0 + $0x66] sm:$0x3]  ;;  %v858_v35 = vld [vmem:[#allocation0 + $0x341] ss:$8 sm:$0xf]  }
  0x3e   :  { %378 = vst [vmem:[#allocation0 + $0x1a8] sm:$0x3] %v1156_v32  ;;  %383 = vst [vmem:[#allocation0 + $0x1a0] sm:$0x3] %v1157_v33  ;;  %v1159_v36 = vld [vmem:[%s1811_s0 + $0x64] sm:$0x3]  ;;  %v862_v37 = vsel %vm642_vm0, %v860_v30, %v858_v35 }
  0x3f   :  { %388 = vst [vmem:[#allocation0 + $0x198] sm:$0x3] %v1158_v34  ;;  %393 = vst [vmem:[#allocation0 + $0x190] sm:$0x3] %v1159_v36  ;;  %v1160_v38 = vld [vmem:[%s1811_s0 + $0x62] sm:$0x3]  ;;  %863 = vrot.lane.b32.xlu1 %v862_v37, %s1240_s10 }
  0x40   :  { %v1161_v39 = vld [vmem:[%s1811_s0 + $0x60] sm:$0x3]  ;;  %v1122_v40 = vld [vmem:[%s1811_s0 + $0xae] sm:$0x3]  ;;  %398 = vst [vmem:[#allocation0 + $0x188] sm:$0x3] %v1160_v38 }
  0x41   :  { %403 = vst [vmem:[#allocation0 + $0x180] sm:$0x3] %v1161_v39  ;;  %208 = vst [vmem:[#allocation0 + $0x2b8] sm:$0x3] %v1122_v40  ;;  %v1123_v41 = vld [vmem:[%s1811_s0 + $0xac] sm:$0x3] }
  0x42   :  { %v1124_v42 = vld [vmem:[%s1811_s0 + $0xaa] sm:$0x3]  ;;  %v1125_v43 = vld [vmem:[%s1811_s0 + $0xa8] sm:$0x3]  ;;  %213 = vst [vmem:[#allocation0 + $0x2b0] sm:$0x3] %v1123_v41 }
  0x43   :  { %v871_v44 = vld [vmem:[#allocation0 + $0x81] ss:$8 sm:$0xf0]   ;;  %218 = vst [vmem:[#allocation0 + $0x2a8] sm:$0x3] %v1124_v42 }
  0x44   :  { %223 = vst [vmem:[#allocation0 + $0x2a0] sm:$0x3] %v1125_v43  ;;  %v1126_v45 = vld [vmem:[%s1811_s0 + $0xa6] sm:$0x3]  ;;  %v1127_v46 = vld [vmem:[%s1811_s0 + $0xa4] sm:$0x3] }
  0x45   :  { %228 = vst [vmem:[#allocation0 + $0x298] sm:$0x3] %v1126_v45  ;;  %v1128_v47 = vld [vmem:[%s1811_s0 + $0xa2] sm:$0x3]  ;;  %v1129_v48 = vld [vmem:[%s1811_s0 + $0xa0] sm:$0x3] }
  0x46   :  { %v869_v49 = vld [vmem:[#allocation0 + $0x81] ss:$8 sm:$0xf]   ;;  %233 = vst [vmem:[#allocation0 + $0x290] sm:$0x3] %v1127_v46 }
  0x47   :  { %238 = vst [vmem:[#allocation0 + $0x288] sm:$0x3] %v1128_v47  ;;  %243 = vst [vmem:[#allocation0 + $0x280] sm:$0x3] %v1129_v48  ;;  %v1090_v50 = vld [vmem:[%s1811_s0 + $0xee] sm:$0x3]  ;;  %v873_v51 = vsel %vm642_vm0, %v871_v44, %v869_v49 }
  0x48   :  { %48 = vst [vmem:[#allocation0 + $0x3b8] sm:$0x3] %v1090_v50  ;;  %v1091_v52 = vld [vmem:[%s1811_s0 + $0xec] sm:$0x3]  ;;  %v1092_v53 = vld [vmem:[%s1811_s0 + $0xea] sm:$0x3]  ;;  %874 = vrot.lane.b32.xlu0 %v873_v51, %s1240_s10 }
  0x49   :  { %v1093_v54 = vld [vmem:[%s1811_s0 + $0xe8] sm:$0x3]  ;;  %53 = vst [vmem:[#allocation0 + $0x3b0] sm:$0x3] %v1091_v52  ;;  %58 = vst [vmem:[#allocation0 + $0x3a8] sm:$0x3] %v1092_v53 }
  0x4a   :  { %v882_v55 = vld [vmem:[#allocation0 + $0x181] ss:$8 sm:$0xf0]   ;;  %63 = vst [vmem:[#allocation0 + $0x3a0] sm:$0x3] %v1093_v54 }
  0x4b   :  { %v1094_v56 = vld [vmem:[%s1811_s0 + $0xe6] sm:$0x3]  ;;  %v1095_v57 = vld [vmem:[%s1811_s0 + $0xe4] sm:$0x3]  ;;  %v1096_v58 = vld [vmem:[%s1811_s0 + $0xe2] sm:$0x3] }
  0x4c   :  { %68 = vst [vmem:[#allocation0 + $0x398] sm:$0x3] %v1094_v56  ;;  %v1097_v59 = vld [vmem:[%s1811_s0 + $0xe0] sm:$0x3]  ;;  %73 = vst [vmem:[#allocation0 + $0x390] sm:$0x3] %v1095_v57 }
  0x4d   :  { %v880_v60 = vld [vmem:[#allocation0 + $0x181] ss:$8 sm:$0xf]   ;;  %78 = vst [vmem:[#allocation0 + $0x388] sm:$0x3] %v1096_v58 }
  0x4e   :  { %83 = vst [vmem:[#allocation0 + $0x380] sm:$0x3] %v1097_v59  ;;  %v1178_v61 = vld [vmem:[%s1811_s0 + $0x3e] sm:$0x3]  ;;  %v884_v62 = vsel %vm642_vm0, %v882_v55, %v880_v60  ;;  %v1179_v0 = vld [vmem:[%s1811_s0 + $0x3c] sm:$0x3] }
  0x4f   :  { %v893_v63 = vld [vmem:[#allocation0 + $0x281] ss:$8 sm:$0xf0]   ;;  %488 = vst [vmem:[#allocation0 + $0xf8] sm:$0x3] %v1178_v61  ;;  %885 = vrot.lane.b32.xlu1 %v884_v62, %s1240_s10 }
  0x50   :  { %493 = vst [vmem:[#allocation0 + $0xf0] sm:$0x3] %v1179_v0  ;;  %v1180_v1 = vld [vmem:[%s1811_s0 + $0x3a] sm:$0x3]  ;;  %v1181_v2 = vld [vmem:[%s1811_s0 + $0x38] sm:$0x3] }
  0x51   :  { %v1182_v3 = vld [vmem:[%s1811_s0 + $0x36] sm:$0x3]  ;;  %v891_v4 = vld [vmem:[#allocation0 + $0x281] ss:$8 sm:$0xf]  }
  0x52   :  { %498 = vst [vmem:[#allocation0 + $0xe8] sm:$0x3] %v1180_v1  ;;  %503 = vst [vmem:[#allocation0 + $0xe0] sm:$0x3] %v1181_v2  ;;  %v1183_v5 = vld [vmem:[%s1811_s0 + $0x34] sm:$0x3]  ;;  %v895_v6 = vsel %vm642_vm0, %v893_v63, %v891_v4 }
  0x53   :  { %508 = vst [vmem:[#allocation0 + $0xd8] sm:$0x3] %v1182_v3  ;;  %513 = vst [vmem:[#allocation0 + $0xd0] sm:$0x3] %v1183_v5  ;;  %v1184_v7 = vld [vmem:[%s1811_s0 + $0x32] sm:$0x3]  ;;  %896 = vrot.lane.b32.xlu0 %v895_v6, %s1240_s10 }
  0x54   :  { %v1185_v8 = vld [vmem:[%s1811_s0 + $0x30] sm:$0x3]  ;;  %v1146_v9 = vld [vmem:[%s1811_s0 + $0x7e] sm:$0x3]  ;;  %518 = vst [vmem:[#allocation0 + $0xc8] sm:$0x3] %v1184_v7 }
  0x55   :  { %v904_v10 = vld [vmem:[#allocation0 + $0x381] ss:$8 sm:$0xf0]   ;;  %523 = vst [vmem:[#allocation0 + $0xc0] sm:$0x3] %v1185_v8 }
  0x56   :  { %328 = vst [vmem:[#allocation0 + $0x1f8] sm:$0x3] %v1146_v9  ;;  %v1147_v11 = vld [vmem:[%s1811_s0 + $0x7c] sm:$0x3]  ;;  %v1148_v12 = vld [vmem:[%s1811_s0 + $0x7a] sm:$0x3] }
  0x57   :  { %333 = vst [vmem:[#allocation0 + $0x1f0] sm:$0x3] %v1147_v11  ;;  %v1149_v13 = vld [vmem:[%s1811_s0 + $0x78] sm:$0x3]  ;;  %v1150_v14 = vld [vmem:[%s1811_s0 + $0x76] sm:$0x3] }
  0x58   :  { %v902_v15 = vld [vmem:[#allocation0 + $0x381] ss:$8 sm:$0xf]   ;;  %338 = vst [vmem:[#allocation0 + $0x1e8] sm:$0x3] %v1148_v12 }
  0x59   :  { %343 = vst [vmem:[#allocation0 + $0x1e0] sm:$0x3] %v1149_v13  ;;  %348 = vst [vmem:[#allocation0 + $0x1d8] sm:$0x3] %v1150_v14  ;;  %v1151_v16 = vld [vmem:[%s1811_s0 + $0x74] sm:$0x3]  ;;  %v906_v17 = vsel %vm642_vm0, %v904_v10, %v902_v15 }
  0x5a   :  { %353 = vst [vmem:[#allocation0 + $0x1d0] sm:$0x3] %v1151_v16  ;;  %v1152_v18 = vld [vmem:[%s1811_s0 + $0x72] sm:$0x3]  ;;  %v1153_v19 = vld [vmem:[%s1811_s0 + $0x70] sm:$0x3]  ;;  %907 = vrot.lane.b32.xlu1 %v906_v17, %s1240_s10 }
  0x5b   :  { %v1114_v20 = vld [vmem:[%s1811_s0 + $0xbe] sm:$0x3]  ;;  %358 = vst [vmem:[#allocation0 + $0x1c8] sm:$0x3] %v1152_v18  ;;  %363 = vst [vmem:[#allocation0 + $0x1c0] sm:$0x3] %v1153_v19 }
  0x5c   :  { %168 = vst [vmem:[#allocation0 + $0x2f8] sm:$0x3] %v1114_v20  ;;  %v1115_v21 = vld [vmem:[%s1811_s0 + $0xbc] sm:$0x3]  ;;  %v1116_v22 = vld [vmem:[%s1811_s0 + $0xba] sm:$0x3] }
  0x5d   :  { %v1117_v23 = vld [vmem:[%s1811_s0 + $0xb8] sm:$0x3]  ;;  %173 = vst [vmem:[#allocation0 + $0x2f0] sm:$0x3] %v1115_v21  ;;  %178 = vst [vmem:[#allocation0 + $0x2e8] sm:$0x3] %v1116_v22 }
  0x5e   :  { %v915_v24 = vld [vmem:[#allocation0 + $0xc1] ss:$8 sm:$0xf0]   ;;  %183 = vst [vmem:[#allocation0 + $0x2e0] sm:$0x3] %v1117_v23 }
  0x5f   :  { %v1118_v25 = vld [vmem:[%s1811_s0 + $0xb6] sm:$0x3]  ;;  %v1119_v26 = vld [vmem:[%s1811_s0 + $0xb4] sm:$0x3]  ;;  %v1120_v27 = vld [vmem:[%s1811_s0 + $0xb2] sm:$0x3] }
  0x60   :  { %188 = vst [vmem:[#allocation0 + $0x2d8] sm:$0x3] %v1118_v25  ;;  %v1121_v28 = vld [vmem:[%s1811_s0 + $0xb0] sm:$0x3]  ;;  %193 = vst [vmem:[#allocation0 + $0x2d0] sm:$0x3] %v1119_v26 }
  0x61   :  { %v913_v29 = vld [vmem:[#allocation0 + $0xc1] ss:$8 sm:$0xf]   ;;  %198 = vst [vmem:[#allocation0 + $0x2c8] sm:$0x3] %v1120_v27 }
  0x62   :  { %203 = vst [vmem:[#allocation0 + $0x2c0] sm:$0x3] %v1121_v28  ;;  %v1082_v30 = vld [vmem:[%s1811_s0 + $0xfe] sm:$0x3]  ;;  %v917_v31 = vsel %vm642_vm0, %v915_v24, %v913_v29  ;;  %v1083_v32 = vld [vmem:[%s1811_s0 + $0xfc] sm:$0x3] }
  0x63   :  { %8 = vst [vmem:[#allocation0 + $0x3f8] sm:$0x3] %v1082_v30  ;;  %v1084_v33 = vld [vmem:[%s1811_s0 + $0xfa] sm:$0x3]  ;;  %v1085_v34 = vld [vmem:[%s1811_s0 + $0xf8] sm:$0x3]  ;;  %918 = vrot.lane.b32.xlu0 %v917_v31, %s1240_s10 }
  0x64   :  { %v926_v35 = vld [vmem:[#allocation0 + $0x1c1] ss:$8 sm:$0xf0]   ;;  %13 = vst [vmem:[#allocation0 + $0x3f0] sm:$0x3] %v1083_v32 }
  0x65   :  { %18 = vst [vmem:[#allocation0 + $0x3e8] sm:$0x3] %v1084_v33  ;;  %23 = vst [vmem:[#allocation0 + $0x3e0] sm:$0x3] %v1085_v34  ;;  %v1086_v36 = vld [vmem:[%s1811_s0 + $0xf6] sm:$0x3] }
  0x66   :  { %28 = vst [vmem:[#allocation0 + $0x3d8] sm:$0x3] %v1086_v36  ;;  %v1087_v37 = vld [vmem:[%s1811_s0 + $0xf4] sm:$0x3]  ;;  %v1088_v38 = vld [vmem:[%s1811_s0 + $0xf2] sm:$0x3] }
  0x67   :  { %v1089_v39 = vld [vmem:[%s1811_s0 + $0xf0] sm:$0x3]  ;;  %33 = vst [vmem:[#allocation0 + $0x3d0] sm:$0x3] %v1087_v37  ;;  %38 = vst [vmem:[#allocation0 + $0x3c8] sm:$0x3] %v1088_v38 }
  0x68   :  { %v924_v40 = vld [vmem:[#allocation0 + $0x1c1] ss:$8 sm:$0xf]   ;;  %43 = vst [vmem:[#allocation0 + $0x3c0] sm:$0x3] %v1089_v39 }
  0x69   :  { %v640_v41 = vld [vmem:[#allocation0] ss:$8 sm:$0xf]   ;;  %v928_v42 = vsel %vm642_vm0, %v926_v35, %v924_v40  ;;  %v937_v43 = vld [vmem:[#allocation0 + $0x2c1] ss:$8 sm:$0xf0]  }
  0x6a   :  { %v641_v44 = vld [vmem:[#allocation0] ss:$8 sm:$0xf0]   ;;  %929 = vrot.lane.b32.xlu1 %v928_v42, %s1240_s10  ;;  %v935_v48 = vld [vmem:[#allocation0 + $0x2c1] ss:$8 sm:$0xf]  }
  0x6b   :  { %v643_v45 = vsel %vm642_vm0, %v641_v44, %v640_v41  ;;  %v710_v46 = vld [vmem:[#allocation0 + $0x200] ss:$8 sm:$0xf]   ;;  %v939_v51 = vsel %vm642_vm0, %v937_v43, %v935_v48 }
  0x6c   :  { %v712_v47 = vld [vmem:[#allocation0 + $0x200] ss:$8 sm:$0xf0]   ;;  %645 = vst.msk [vmem:[%s1812_s1] sm:$0xff] %vm644_vm1, %v643_v45   ;;  %940 = vrot.lane.b32.xlu0 %v939_v51, %s1240_s10 }
  0x6d   :  { %v714_v49 = vsel %vm642_vm0, %v712_v47, %v710_v46  ;;  %v674_v50 = vld [vmem:[#allocation0 + $0x100] ss:$8 sm:$0xf]   ;;  %v948_v54 = vld [vmem:[#allocation0 + $0x3c1] ss:$8 sm:$0xf0]  }
  0x6e   :  { %1216 = vst.msk [vmem:[%s1812_s1 + $0x40] sm:$0xff] %vm644_vm1, %v714_v49   ;;  %v676_v52 = vld [vmem:[#allocation0 + $0x100] ss:$8 sm:$0xf0]  }
  0x6f   :  { %v746_v53 = vld [vmem:[#allocation0 + $0x300] ss:$8 sm:$0xf]   ;;  %v678_v55 = vsel %vm642_vm0, %v676_v52, %v674_v50  ;;  %v946_v60 = vld [vmem:[#allocation0 + $0x3c1] ss:$8 sm:$0xf]  }
  0x70   :  { %v748_v56 = vld [vmem:[#allocation0 + $0x300] ss:$8 sm:$0xf0]   ;;  %1212 = vst.msk [vmem:[%s1812_s1 + $0x20] sm:$0xff] %vm644_vm1, %v678_v55   ;;  %v950_v63 = vsel %vm642_vm0, %v948_v54, %v946_v60 }
  0x71   :  { %v750_v57 = vsel %vm642_vm0, %v748_v56, %v746_v53  ;;  %v647_v58 = vld [vmem:[#allocation0 + $0x40] ss:$8 sm:$0xf]   ;;  %951 = vrot.lane.b32.xlu1 %v950_v63, %s1240_s10 }
  0x72   :  { %v649_v59 = vld [vmem:[#allocation0 + $0x40] ss:$8 sm:$0xf0]   ;;  %1220 = vst.msk [vmem:[%s1812_s1 + $0x60] sm:$0xff] %vm644_vm1, %v750_v57  }
  0x73   :  { %v651_v61 = vsel %vm642_vm0, %v649_v59, %v647_v58  ;;  %v683_v62 = vld [vmem:[#allocation0 + $0x140] ss:$8 sm:$0xf]  }
  0x74   :  { %1209 = vst.msk [vmem:[%s1812_s1 + $0x8] sm:$0xff] %vm644_vm1, %v651_v61   ;;  %v685_v0 = vld [vmem:[#allocation0 + $0x140] ss:$8 sm:$0xf0]  }
  0x75   :  { %v719_v1 = vld [vmem:[#allocation0 + $0x240] ss:$8 sm:$0xf]   ;;  %v687_v2 = vsel %vm642_vm0, %v685_v0, %v683_v62 }
  0x76   :  { %v721_v3 = vld [vmem:[#allocation0 + $0x240] ss:$8 sm:$0xf0]   ;;  %1213 = vst.msk [vmem:[%s1812_s1 + $0x28] sm:$0xff] %vm644_vm1, %v687_v2  }
  0x77   :  { %v755_v4 = vld [vmem:[#allocation0 + $0x340] ss:$8 sm:$0xf]   ;;  %v723_v5 = vsel %vm642_vm0, %v721_v3, %v719_v1 }
  0x78   :  { %v757_v6 = vld [vmem:[#allocation0 + $0x340] ss:$8 sm:$0xf0]   ;;  %1217 = vst.msk [vmem:[%s1812_s1 + $0x48] sm:$0xff] %vm644_vm1, %v723_v5  }
  0x79   :  { %v656_v7 = vld [vmem:[#allocation0 + $0x80] ss:$8 sm:$0xf]   ;;  %v759_v8 = vsel %vm642_vm0, %v757_v6, %v755_v4 }
  0x7a   :  { %v658_v9 = vld [vmem:[#allocation0 + $0x80] ss:$8 sm:$0xf0]   ;;  %1221 = vst.msk [vmem:[%s1812_s1 + $0x68] sm:$0xff] %vm644_vm1, %v759_v8  }
  0x7b   :  { %v692_v10 = vld [vmem:[#allocation0 + $0x180] ss:$8 sm:$0xf]   ;;  %v660_v11 = vsel %vm642_vm0, %v658_v9, %v656_v7 }
  0x7c   :  { %v694_v12 = vld [vmem:[#allocation0 + $0x180] ss:$8 sm:$0xf0]   ;;  %1210 = vst.msk [vmem:[%s1812_s1 + $0x10] sm:$0xff] %vm644_vm1, %v660_v11  }
  0x7d   :  { %v728_v13 = vld [vmem:[#allocation0 + $0x280] ss:$8 sm:$0xf]   ;;  %v696_v14 = vsel %vm642_vm0, %v694_v12, %v692_v10 }
  0x7e   :  { %v730_v15 = vld [vmem:[#allocation0 + $0x280] ss:$8 sm:$0xf0]   ;;  %1214 = vst.msk [vmem:[%s1812_s1 + $0x30] sm:$0xff] %vm644_vm1, %v696_v14  }
  0x7f   :  { %v764_v16 = vld [vmem:[#allocation0 + $0x380] ss:$8 sm:$0xf]   ;;  %v732_v17 = vsel %vm642_vm0, %v730_v15, %v728_v13 }
  0x80   :  { %v766_v18 = vld [vmem:[#allocation0 + $0x380] ss:$8 sm:$0xf0]   ;;  %1218 = vst.msk [vmem:[%s1812_s1 + $0x50] sm:$0xff] %vm644_vm1, %v732_v17  }
  0x81   :  { %v665_v19 = vld [vmem:[#allocation0 + $0xc0] ss:$8 sm:$0xf]   ;;  %v768_v20 = vsel %vm642_vm0, %v766_v18, %v764_v16 }
  0x82   :  { %v667_v21 = vld [vmem:[#allocation0 + $0xc0] ss:$8 sm:$0xf0]   ;;  %1222 = vst.msk [vmem:[%s1812_s1 + $0x70] sm:$0xff] %vm644_vm1, %v768_v20  }
  0x83   :  { %v701_v22 = vld [vmem:[#allocation0 + $0x1c0] ss:$8 sm:$0xf]   ;;  %v669_v23 = vsel %vm642_vm0, %v667_v21, %v665_v19 }
  0x84   :  { %v703_v24 = vld [vmem:[#allocation0 + $0x1c0] ss:$8 sm:$0xf0]   ;;  %1211 = vst.msk [vmem:[%s1812_s1 + $0x18] sm:$0xff] %vm644_vm1, %v669_v23  }
  0x85   :  { %v737_v25 = vld [vmem:[#allocation0 + $0x2c0] ss:$8 sm:$0xf]   ;;  %v705_v26 = vsel %vm642_vm0, %v703_v24, %v701_v22 }
  0x86   :  { %v739_v27 = vld [vmem:[#allocation0 + $0x2c0] ss:$8 sm:$0xf0]   ;;  %1215 = vst.msk [vmem:[%s1812_s1 + $0x38] sm:$0xff] %vm644_vm1, %v705_v26  }
  0x87   :  { %v773_v28 = vld [vmem:[#allocation0 + $0x3c0] ss:$8 sm:$0xf]   ;;  %v741_v29 = vsel %vm642_vm0, %v739_v27, %v737_v25  ;;  %v788_v32 = vpop.permute.xlu0 %787  }
  0x88   :  { %v775_v30 = vld [vmem:[#allocation0 + $0x3c0] ss:$8 sm:$0xf0]   ;;  %1219 = vst.msk [vmem:[%s1812_s1 + $0x58] sm:$0xff] %vm644_vm1, %v741_v29  }
  0x89   :  { %v777_v31 = vsel %vm642_vm0, %v775_v30, %v773_v28  ;;  %790 = vst.msk [vmem:[%s1812_s1] sm:$0xff] %vm789_vm2, %v788_v32  }
  0x8a   :  { %1223 = vst.msk [vmem:[%s1812_s1 + $0x78] sm:$0xff] %vm644_vm1, %v777_v31  }
  0x8c   :  { %v809_v33 = vpop.permute.xlu1 %808  }
  0x8d   :  { %1225 = vst.msk [vmem:[%s1812_s1 + $0x40] sm:$0xff] %vm789_vm2, %v809_v33  }
  0x90   :  { %v798_v34 = vpop.permute.xlu0 %797  }
  0x91   :  { %1224 = vst.msk [vmem:[%s1812_s1 + $0x20] sm:$0xff] %vm789_vm2, %v798_v34  }
  0x97   :  { %v820_v35 = vpop.permute.xlu1 %819  }
  0x98   :  { %1226 = vst.msk [vmem:[%s1812_s1 + $0x60] sm:$0xff] %vm789_vm2, %v820_v35  }
  0xa0   :  { %v831_v36 = vpop.permute.xlu0 %830  }
  0xa1   :  { %1227 = vst.msk [vmem:[%s1812_s1 + $0x8] sm:$0xff] %vm789_vm2, %v831_v36  }
  0xa6   :  { %v842_v37 = vpop.permute.xlu1 %841  }
  0xa7   :  { %1228 = vst.msk [vmem:[%s1812_s1 + $0x28] sm:$0xff] %vm789_vm2, %v842_v37  }
  0xab   :  { %v853_v38 = vpop.permute.xlu0 %852  }
  0xac   :  { %1229 = vst.msk [vmem:[%s1812_s1 + $0x48] sm:$0xff] %vm789_vm2, %v853_v38  }
  0xb1   :  { %v864_v39 = vpop.permute.xlu1 %863  }
  0xb2   :  { %1230 = vst.msk [vmem:[%s1812_s1 + $0x68] sm:$0xff] %vm789_vm2, %v864_v39  }
  0xba   :  { %v875_v40 = vpop.permute.xlu0 %874  }
  0xbb   :  { %1231 = vst.msk [vmem:[%s1812_s1 + $0x10] sm:$0xff] %vm789_vm2, %v875_v40  }
  0xc1   :  { %v886_v41 = vpop.permute.xlu1 %885  }
  0xc2   :  { %1232 = vst.msk [vmem:[%s1812_s1 + $0x30] sm:$0xff] %vm789_vm2, %v886_v41  }
  0xc5   :  { %v897_v42 = vpop.permute.xlu0 %896  }
  0xc6   :  { %1233 = vst.msk [vmem:[%s1812_s1 + $0x50] sm:$0xff] %vm789_vm2, %v897_v42  }
  0xcc   :  { %v908_v43 = vpop.permute.xlu1 %907  }
  0xcd   :  { %1234 = vst.msk [vmem:[%s1812_s1 + $0x70] sm:$0xff] %vm789_vm2, %v908_v43  }
  0xd5   :  { %v919_v44 = vpop.permute.xlu0 %918  }
  0xd6   :  { %1235 = vst.msk [vmem:[%s1812_s1 + $0x18] sm:$0xff] %vm789_vm2, %v919_v44  }
  0xdc   :  { %v930_v45 = vpop.permute.xlu1 %929  }
  0xdd   :  { %1236 = vst.msk [vmem:[%s1812_s1 + $0x38] sm:$0xff] %vm789_vm2, %v930_v45  }
  0xde   :  { %v941_v46 = vpop.permute.xlu0 %940  }
  0xdf   :  { %1237 = vst.msk [vmem:[%s1812_s1 + $0x58] sm:$0xff] %vm789_vm2, %v941_v46  }
  0xe3   :  { %v952_v47 = vpop.permute.xlu1 %951  }
  0xe4   :  { %1238 = vst.msk [vmem:[%s1812_s1 + $0x78] sm:$0xff] %vm789_vm2, %v952_v47  }

// kernel: ffc_bn_act.5
= control target key start
LH: loop header
LB: loop body
LE: loop exit
PB: predicated region body
PF: predicated region fallthrough
CT: control target
= control target key end

     0   :  { %vm44_vm0 = vcmask 1043456   ;;  %v737_v1 = vmov 0.0   ;;  %vm738_vm1 = vmmov 0   ;;  %v739_v6 = vmov 0   ;;  %s856_s1 = inlined_call_operand.vmem [shape: f32[4,384], index: 1, kind: input, shape index: {}]   ;;  %s857_s3 = inlined_call_operand.vmem [shape: f32[4,4], index: 3, kind: input, shape index: {}]   ;;  %s858_s0 = inlined_call_operand.vmem [shape: f32[4,384], index: 0, kind: input, shape index: {}]   ;;  %s859_s2 = inlined_call_operand.vmem [shape: f32[4,4], index: 2, kind: input, shape index: {}]   ;;  %s860_s6 = inlined_call_operand.vmem [shape: f32[4,1], index: 6, kind: input, shape index: {}]   ;;  %s861_s5 = inlined_call_operand.vmem [shape: f32[4,4], index: 5, kind: input, shape index: {}]   ;;  %s862_s4 = inlined_call_operand.vmem [shape: f32[4,4], index: 4, kind: input, shape index: {}]   ;;  %s863_s7 = inlined_call_operand.vmem [shape: f32[4,1], index: 7, kind: input, shape index: {}]   ;;  %s864_s8 = inlined_call_operand.vmem [shape: f32[4,384], index: 8, kind: output, shape index: {0}]   ;;  %s865_s9 = inlined_call_operand.vmem [shape: f32[4,384], index: 9, kind: output, shape index: {1}]  }
   0x1   :  { %v33_v0 = vld [vmem:[%s856_s1] sm:$0xff]  ;;  %115 = vmatprep.mubr.f32.mxu0 %v737_v1  ;;  %707 = vmatprep.subr.mxu1 %v737_v1  ;;  %v34_v5 = vld [vmem:[%s856_s1 + $0x8] sm:$0xf]  ;;  %vm40_vm2 = vcmask 31744  }
   0x2   :  { %v31_v2 = vld [vmem:[%s858_s0] sm:$0xff]  ;;  %v39_v3 = vcombine.high %v33_v0, %v33_v0  ;;  %709 = vmatprep.mubr.msk.f32.mxu1 %vm738_vm1, %v737_v1  ;;  %734 = vset.pattern.permute.xlu0 %v739_v6  ;;  %v32_v8 = vld [vmem:[%s858_s0 + $0x8] sm:$0xf] }
   0x3   :  { %v194_v4 = vcombine.high %v31_v2, %v31_v2  ;;  %v36_v7 = vld [vmem:[%s857_s3] sm:$0xf]  ;;  %708 = vmatpush3.msk.msra.mxu1 %vm44_vm0, %v34_v5 }
   0x4   :  { %679 = vmatprep.subr.msk.mxu0 %vm44_vm0, %v39_v3  ;;  %710 = vmatmul.mubr.msk.f32.vlgmr.msra.gmra.mrb[0].mxu1 %vm40_vm2, %v36_v7  ;;  %v35_v9 = vld [vmem:[%s859_s2] sm:$0xf] }
   0x5   :  { %680 = vmatpush1.msk.msra.mxu0 %vm44_vm0, %v33_v0  ;;  %712 = vmatprep.subr.mxu1 %v737_v1  ;;  %v635_v10 = vld [vmem:[%s860_s6] sm:$0xf] }
   0x6   :  { %681 = vmatmul.mubr.msk.f32.vlgmr.msra.gmra.mrb[0].mxu0 %vm40_vm2, %v36_v7  ;;  %684 = vmatprep.subr.msk.mxu0 %vm44_vm0, %v194_v4  ;;  %v346_v11 = vld [vmem:[%s861_s5] sm:$0xf] }
   0x7   :  { %685 = vmatpush1.msk.msra.mxu0 %vm44_vm0, %v31_v2  ;;  %268 = vmatprep.mubr.f32.mxu0 %v737_v1  ;;  %v345_v12 = vld [vmem:[%s862_s4] sm:$0xf] }
   0x8   :  { %713 = vmatpush3.msk.msra.mxu1 %vm44_vm0, %v32_v8  ;;  %714 = vmatprep.mubr.msk.f32.mxu1 %vm738_vm1, %v737_v1  ;;  %v653_v13 = vld [vmem:[%s863_s7] sm:$0xf] }
   0x9   :  { %715 = vmatmul.mubr.msk.f32.vlgmr.msra.gmra.mrb[2].mxu1 %vm40_vm2, %v35_v9  ;;  %689 = vmatprep.subr.msk.mxu0 %vm44_vm0, %v39_v3 }
   0xa   :  { %717 = vmatprep.subr.mxu1 %v737_v1  ;;  %719 = vmatprep.mubr.msk.f32.mxu1 %vm738_vm1, %v737_v1 }
   0xb   :  { %718 = vmatpush3.msk.msra.mxu1 %vm44_vm0, %v34_v5  ;;  %638 = vperm.xlu0 %734, %v635_v10  }
   0xc   :  { %722 = vmatprep.subr.mxu1 %v737_v1 }
   0xd   :  { %720 = vmatmul.mubr.msk.f32.vlgmr.msra.gmra.mrb[4].mxu1 %vm40_vm2, %v346_v11 }
   0xe   :  { %686 = vmatmul.mubr.msk.f32.vlgmr.msra.gmra.mrb[0].mxu0 %vm40_vm2, %v35_v9  ;;  %723 = vmatpush3.msk.msra.mxu1 %vm44_vm0, %v32_v8 }
   0xf   :  { %690 = vmatpush1.msk.msra.mxu0 %vm44_vm0, %v33_v0  ;;  %414 = vmatprep.mubr.f32.mxu0 %v737_v1 }
  0x10   :  { %694 = vmatprep.subr.msk.mxu0 %vm44_vm0, %v194_v4  ;;  %724 = vmatprep.mubr.msk.f32.mxu1 %vm738_vm1, %v737_v1 }
  0x11   :  { %725 = vmatmul.mubr.msk.f32.vlgmr.msra.gmra.mrb[6].mxu1 %vm40_vm2, %v345_v12  ;;  %656 = vperm.xlu0 %734, %v653_v13  }
  0x12   :  { %691 = vmatmul.mubr.msk.f32.vlgmr.msra.gmra.mrb[2].mxu0 %vm40_vm2, %v346_v11 }
  0x13   :  { %695 = vmatpush1.msk.msra.mxu0 %vm44_vm0, %v31_v2  ;;  %558 = vmatprep.mubr.f32.mxu0 %v737_v1 }
  0x1a   :  { %696 = vmatmul.mubr.msk.f32.vlgmr.msra.gmra.mrb[2].mxu0 %vm40_vm2, %v345_v12 }
  0x8a   :  { %v639_v19 = vpop.permute.xlu0 %638 }
  0x90   :  { %v657_v30 = vpop.permute.xlu0 %656 }
  0xd7   :  { %v188_v14 = vpop.f32.mrb[0].mxu1 }
  0xd8   :  { %v711_v15 = vpop.f32.mrb[1].mxu1 }
  0xdc   :  { %v341_v16 = vpop.f32.mrb[2].mxu1 }
  0xdd   :  { %v342_v17 = vadd.f32 %v341_v16, %v188_v14  ;;  %v716_v18 = vpop.f32.mrb[3].mxu1 }
  0xdf   :  { %v643_v20 = vadd.f32 %v639_v19, %v342_v17 }
  0xe0   :  { %v487_v21 = vpop.f32.mrb[4].mxu1 }
  0xe1   :  { %v270_v22 = vpop.f32.mrb[0].mxu0  ;;  %v646_v23 = vmax.f32 %v643_v20, 0.0  ;;  %v721_v24 = vpop.f32.mrb[5].mxu1 }
  0xe2   :  { %v641_v25 = vadd.f32 %v639_v19, %v270_v22  ;;  %v272_v26 = vpop.f32.mrb[1].mxu0 }
  0xe3   :  { %v642_v27 = vadd.f32 %v639_v19, %v272_v26  ;;  %652 = vst [vmem:[%s864_s8 + $0x8] sm:$0xf] %v646_v23 }
  0xe4   :  { %v644_v28 = vmax.f32 %v641_v25, 0.0  ;;  %v631_v29 = vpop.f32.mrb[6].mxu1 }
  0xe5   :  { %v645_v31 = vmax.f32 %v642_v27, 0.0  ;;  %v632_v32 = vadd.f32 %v631_v29, %v487_v21  ;;  %v726_v33 = vpop.f32.mrb[7].mxu1 }
  0xe7   :  { %v649_v34 = vcombine.low %v644_v28, %v645_v31  ;;  %v661_v35 = vadd.f32 %v657_v30, %v632_v32 }
  0xe9   :  { %651 = vst [vmem:[%s864_s8] sm:$0xff] %v649_v34  ;;  %v664_v36 = vmax.f32 %v661_v35, 0.0 }
  0xeb   :  { %670 = vst [vmem:[%s865_s9 + $0x8] sm:$0xf] %v664_v36 }
  0xed   :  { %v560_v37 = vpop.f32.mrb[2].mxu0 }
  0xee   :  { %v659_v38 = vadd.f32 %v657_v30, %v560_v37  ;;  %v562_v39 = vpop.f32.mrb[3].mxu0 }
  0xef   :  { %v660_v40 = vadd.f32 %v657_v30, %v562_v39 }
  0xf0   :  { %v662_v41 = vmax.f32 %v659_v38, 0.0 }
  0xf1   :  { %v663_v42 = vmax.f32 %v660_v40, 0.0 }
  0xf3   :  { %v667_v43 = vcombine.low %v662_v41, %v663_v42 }
  0xf5   :  { %669 = vst [vmem:[%s865_s9] sm:$0xff] %v667_v43 }

// kernel: reverse.0
= control target key start
LH: loop header
LB: loop body
LE: loop exit
PB: predicated region body
PF: predicated region fallthrough
CT: control target
= control target key end

     0   :  { %v71_v3 = vlaneseq  ;;  %v64_v9 = vld [vmem:[#allocation0 + $0x7] ss:$-1 sm:$0xff]  ;;  %v78_v12 = vld [vmem:[#allocation0 + $0x17] ss:$-1 sm:$0xff]  ;;  %s329_s0 = inlined_call_operand.vmem [shape: f32[4,2,16,7], index: 0, kind: input, shape index: {}]   ;;  %s330_s1 = inlined_call_operand.vmem [shape: f32[4,2,16,7], index: 1, kind: output, shape index: {}]  }
   0x1   :  { %v44_v0 = vld [vmem:[%s329_s0] sm:$0xff]  ;;  %v46_v1 = vld [vmem:[%s329_s0 + $0x8] sm:$0xff]  ;;  %v48_v2 = vld [vmem:[%s329_s0 + $0x10] sm:$0xff]  ;;  %v65_v10 = vrot.slane %v64_v9, 1  ;;  %v79_v14 = vrot.slane %v78_v12, 1 }
   0x2   :  { %45 = vst [vmem:[#allocation0 + $0x8] sm:$0xff] %v44_v0  ;;  %47 = vst [vmem:[#allocation0 + $0x18] sm:$0xff] %v46_v1  ;;  %v50_v4 = vld [vmem:[%s329_s0 + $0x18] sm:$0xff]  ;;  %v52_v5 = vld [vmem:[%s329_s0 + $0x20] sm:$0xff]  ;;  %v72_v11 = vshrl.u32 %v71_v3, 7 }
   0x3   :  { %49 = vst [vmem:[#allocation0 + $0x28] sm:$0xff] %v48_v2  ;;  %v54_v6 = vld [vmem:[%s329_s0 + $0x28] sm:$0xff]  ;;  %51 = vst [vmem:[#allocation0 + $0x38] sm:$0xff] %v50_v4  ;;  %v56_v7 = vld [vmem:[%s329_s0 + $0x30] sm:$0xff] }
   0x4   :  { %53 = vst [vmem:[#allocation0 + $0x48] sm:$0xff] %v52_v5  ;;  %55 = vst [vmem:[#allocation0 + $0x58] sm:$0xff] %v54_v6  ;;  %v58_v8 = vld [vmem:[%s329_s0 + $0x38] sm:$0xff]  ;;  %v92_v13 = vld [vmem:[#allocation0 + $0x27] ss:$-1 sm:$0xff]  ;;  %vm73_vm0 = vcmp.lt.s32.totalorder %v72_v11, 7 }
   0x5   :  { %57 = vst [vmem:[#allocation0 + $0x68] sm:$0xff] %v56_v7  ;;  %59 = vst [vmem:[#allocation0 + $0x78] sm:$0xff] %v58_v8  ;;  %v93_v15 = vrot.slane %v92_v13, 1  ;;  %v106_v16 = vld [vmem:[#allocation0 + $0x37] ss:$-1 sm:$0xff] }
   0x6   :  { %66 = vst [vmem:[#allocation1] sm:$0xff] %v65_v10  ;;  %v107_v17 = vrot.slane %v106_v16, 1  ;;  %v120_v18 = vld [vmem:[#allocation0 + $0x47] ss:$-1 sm:$0xff]  ;;  %v134_v19 = vld [vmem:[#allocation0 + $0x57] ss:$-1 sm:$0xff] }
   0x7   :  { %80 = vst [vmem:[#allocation1 + $0x8] sm:$0xff] %v79_v14  ;;  %94 = vst [vmem:[#allocation1 + $0x10] sm:$0xff] %v93_v15  ;;  %v121_v20 = vrot.slane %v120_v18, 1  ;;  %v135_v21 = vrot.slane %v134_v19, 1  ;;  %v148_v22 = vld [vmem:[#allocation0 + $0x67] ss:$-1 sm:$0xff] }
   0x8   :  { %v162_v23 = vld [vmem:[#allocation0 + $0x77] ss:$-1 sm:$0xff]  ;;  %108 = vst [vmem:[#allocation1 + $0x18] sm:$0xff] %v107_v17  ;;  %v149_v24 = vrot.slane %v148_v22, 1 }
   0x9   :  { %v163_v25 = vrot.slane %v162_v23, 1  ;;  %v69_v26 = vld [vmem:[#allocation0 + $0xf] ss:$-1 sm:$0xff]  ;;  %v83_v27 = vld [vmem:[#allocation0 + $0x1f] ss:$-1 sm:$0xff]  ;;  %122 = vst [vmem:[#allocation1 + $0x20] sm:$0xff] %v121_v20 }
   0xa   :  { %v97_v28 = vld [vmem:[#allocation0 + $0x2f] ss:$-1 sm:$0xff]  ;;  %136 = vst [vmem:[#allocation1 + $0x28] sm:$0xff] %v135_v21  ;;  %v70_v29 = vrot.slane %v69_v26, 1  ;;  %v84_v30 = vrot.slane %v83_v27, 1  ;;  %150 = vst [vmem:[#allocation1 + $0x30] sm:$0xff] %v149_v24 }
   0xb   :  { %v98_v31 = vrot.slane %v97_v28, 1  ;;  %v111_v32 = vld [vmem:[#allocation0 + $0x3f] ss:$-1 sm:$0xff]  ;;  %164 = vst [vmem:[#allocation1 + $0x38] sm:$0xff] %v163_v25  ;;  %v125_v34 = vld [vmem:[#allocation0 + $0x4f] ss:$-1 sm:$0xff] }
   0xc   :  { %v112_v33 = vrot.slane %v111_v32, 1  ;;  %v139_v35 = vld [vmem:[#allocation0 + $0x5f] ss:$-1 sm:$0xff]  ;;  %74 = vst.msk [vmem:[#allocation1] sm:$0xff] %vm73_vm0, %v70_v29  ;;  %88 = vst.msk [vmem:[#allocation1 + $0x8] sm:$0xff] %vm73_vm0, %v84_v30  ;;  %v126_v36 = vrot.slane %v125_v34, 1 }
   0xd   :  { %102 = vst.msk [vmem:[#allocation1 + $0x10] sm:$0xff] %vm73_vm0, %v98_v31  ;;  %v140_v37 = vrot.slane %v139_v35, 1  ;;  %v153_v38 = vld [vmem:[#allocation0 + $0x6f] ss:$-1 sm:$0xff]  ;;  %v167_v39 = vld [vmem:[#allocation0 + $0x7f] ss:$-1 sm:$0xff] }
   0xe   :  { %116 = vst.msk [vmem:[#allocation1 + $0x18] sm:$0xff] %vm73_vm0, %v112_v33  ;;  %v154_v40 = vrot.slane %v153_v38, 1  ;;  %v168_v41 = vrot.slane %v167_v39, 1  ;;  %130 = vst.msk [vmem:[#allocation1 + $0x20] sm:$0xff] %vm73_vm0, %v126_v36 }
   0xf   :  { %144 = vst.msk [vmem:[#allocation1 + $0x28] sm:$0xff] %vm73_vm0, %v140_v37 }
  0x10   :  { %158 = vst.msk [vmem:[#allocation1 + $0x30] sm:$0xff] %vm73_vm0, %v154_v40  ;;  %172 = vst.msk [vmem:[#allocation1 + $0x38] sm:$0xff] %vm73_vm0, %v168_v41 }
  0x13   :  { %v214_v42 = vld [vmem:[#allocation1] sm:$0xff]  ;;  %v216_v43 = vld [vmem:[#allocation1 + $0x8] sm:$0xff] }
  0x14   :  { %v218_v44 = vld [vmem:[#allocation1 + $0x10] sm:$0xff]  ;;  %215 = vst [vmem:[%s330_s1] sm:$0xff] %v214_v42  ;;  %217 = vst [vmem:[%s330_s1 + $0x8] sm:$0xff] %v216_v43 }
  0x15   :  { %219 = vst [vmem:[%s330_s1 + $0x10] sm:$0xff] %v218_v44  ;;  %v220_v45 = vld [vmem:[#allocation1 + $0x18] sm:$0xff]  ;;  %v222_v46 = vld [vmem:[#allocation1 + $0x20] sm:$0xff] }
  0x16   :  { %221 = vst [vmem:[%s330_s1 + $0x18] sm:$0xff] %v220_v45  ;;  %v224_v47 = vld [vmem:[#allocation1 + $0x28] sm:$0xff]  ;;  %223 = vst [vmem:[%s330_s1 + $0x20] sm:$0xff] %v222_v46 }
  0x17   :  { %225 = vst [vmem:[%s330_s1 + $0x28] sm:$0xff] %v224_v47  ;;  %v226_v48 = vld [vmem:[#allocation1 + $0x30] sm:$0xff]  ;;  %v228_v49 = vld [vmem:[#allocation1 + $0x38] sm:$0xff] }
  0x18   :  { %227 = vst [vmem:[%s330_s1 + $0x30] sm:$0xff] %v226_v48  ;;  %229 = vst [vmem:[%s330_s1 + $0x38] sm:$0xff] %v228_v49 }

// kernel: ffc_bn_act.7
= control target key start
LH: loop header
LB: loop body
LE: loop exit
PB: predicated region body
PF: predicated region fallthrough
CT: control target
= control target key end

     0   :  { %v579_v3 = vmov 0.0   ;;  %vm37_vm0 = vcmask 64512   ;;  %vm373_vm1 = vcmask 1043456   ;;  %v580_v16 = vmov 0   ;;  %s713_s0 = inlined_call_operand.vmem [shape: f32[8,512], index: 0, kind: input, shape index: {}]   ;;  %s714_s3 = inlined_call_operand.vmem [shape: f32[16,8], index: 3, kind: input, shape index: {}]   ;;  %s715_s1 = inlined_call_operand.vmem [shape: f32[8,512], index: 1, kind: input, shape index: {}]   ;;  %s716_s2 = inlined_call_operand.vmem [shape: f32[4,512], index: 2, kind: input, shape index: {}]   ;;  %s717_s4 = inlined_call_operand.vmem [shape: f32[8,8], index: 4, kind: input, shape index: {}]   ;;  %s718_s6 = inlined_call_operand.vmem [shape: f32[8,1], index: 6, kind: input, shape index: {}]   ;;  %s719_s5 = inlined_call_operand.vmem [shape: f32[8,4], index: 5, kind: input, shape index: {}]   ;;  %s720_s7 = inlined_call_operand.vmem [shape: f32[8,1], index: 7, kind: input, shape index: {}]   ;;  %s721_s8 = inlined_call_operand.vmem [shape: f32[8,512], index: 8, kind: output, shape index: {0}]   ;;  %s722_s9 = inlined_call_operand.vmem [shape: f32[8,512], index: 9, kind: output, shape index: {1}]  }
   0x1   :  { %v34_v0 = vld [vmem:[%s713_s0 + $0x8] sm:$0xff]  ;;  %v36_v1 = vld [vmem:[%s713_s0 + $0x18] sm:$0xff]  ;;  %v33_v2 = vld [vmem:[%s713_s0] sm:$0xff]  ;;  %108 = vmatprep.mubr.f32.mxu0 %v579_v3  ;;  %185 = vmatprep.mubr.f32.mxu1 %v579_v3  ;;  %vm369_vm2 = vcmask 31744  }
   0x2   :  { %44 = vmatprep.subr.mxu0 %v34_v0  ;;  %121 = vmatprep.subr.mxu1 %v36_v1  ;;  %v35_v4 = vld [vmem:[%s713_s0 + $0x10] sm:$0xff]  ;;  %v31_v5 = vld [vmem:[%s714_s3] sm:$0xff]  ;;  %v200_v6 = vld [vmem:[%s715_s1 + $0x8] sm:$0xff] }
   0x3   :  { %45 = vmatpush1.msra.mxu0 %v33_v2  ;;  %122 = vmatpush1.msra.mxu1 %v35_v4  ;;  %v202_v7 = vld [vmem:[%s715_s1 + $0x18] sm:$0xff]  ;;  %v199_v8 = vld [vmem:[%s715_s1] sm:$0xff]  ;;  %v201_v9 = vld [vmem:[%s715_s1 + $0x10] sm:$0xff] }
   0x4   :  { %554 = vmatmul.mubr.msk.f32.vlgmr.msra.gmra.mrb[0].mxu0 %vm37_vm0, %v31_v5  ;;  %556 = vmatmul.mubr.msk.f32.vlgmr.msra.gmra.mrb[0].mxu1 %vm37_vm0, %v31_v5  ;;  %v363_v10 = vld [vmem:[%s716_s2] sm:$0xff]  ;;  %v32_v11 = vld [vmem:[%s714_s3 + $0x8] sm:$0xff] }
   0x5   :  { %206 = vmatprep.subr.mxu0 %v200_v6  ;;  %277 = vmatprep.subr.mxu1 %v202_v7  ;;  %v364_v12 = vld [vmem:[%s716_s2 + $0x8] sm:$0xff]  ;;  %v367_v13 = vcombine.high %v363_v10, %v363_v10  ;;  %v198_v15 = vld [vmem:[%s717_s4] sm:$0xff] }
   0x6   :  { %207 = vmatpush1.msra.mxu0 %v199_v8  ;;  %278 = vmatpush1.msra.mxu1 %v201_v9  ;;  %v368_v14 = vcombine.high %v364_v12, %v364_v12  ;;  %v352_v17 = vld [vmem:[%s718_s6] sm:$0xff] }
   0x7   :  { %114 = vmatprep.mubr.f32.mxu0 %v579_v3  ;;  %191 = vmatprep.mubr.f32.mxu1 %v579_v3  ;;  %v362_v18 = vld [vmem:[%s719_s5] sm:$0xff] }
   0x8   :  { %555 = vmatmul.mubr.msk.f32.gmra.mrb[2].mxu0 %vm37_vm0, %v32_v11  ;;  %557 = vmatmul.mubr.msk.f32.gmra.mrb[2].mxu1 %vm37_vm0, %v32_v11  ;;  %v528_v19 = vld [vmem:[%s720_s7] sm:$0xff] }
   0x9   :  { %270 = vmatprep.mubr.f32.mxu0 %v579_v3  ;;  %341 = vmatprep.mubr.f32.mxu1 %v579_v3 }
   0xa   :  { %560 = vmatprep.subr.msk.mxu0 %vm373_vm1, %v367_v13  ;;  %563 = vmatprep.subr.msk.mxu1 %vm373_vm1, %v368_v14 }
   0xb   :  { %576 = vset.pattern.permute.xlu0 %v580_v16 }
   0xc   :  { %558 = vmatmul.mubr.msk.f32.vlgmr.msra.gmra.mrb[0].mxu0 %vm37_vm0, %v198_v15  ;;  %559 = vmatmul.mubr.msk.f32.vlgmr.msra.gmra.mrb[0].mxu1 %vm37_vm0, %v198_v15 }
   0xd   :  { %561 = vmatpush1.msk.msra.mxu0 %vm373_vm1, %v363_v10  ;;  %564 = vmatpush1.msk.msra.mxu1 %vm373_vm1, %v364_v12 }
   0xe   :  { %446 = vmatprep.mubr.f32.mxu0 %v579_v3  ;;  %517 = vmatprep.mubr.f32.mxu1 %v579_v3 }
   0xf   :  { %355 = vperm.xlu0 %576, %v352_v17  }
  0x10   :  { %562 = vmatmul.mubr.msk.f32.vlgmr.msra.gmra.mrb[2].mxu0 %vm369_vm2, %v362_v18  ;;  %565 = vmatmul.mubr.msk.f32.vlgmr.msra.gmra.mrb[2].mxu1 %vm369_vm2, %v362_v18 }
  0x13   :  { %531 = vperm.xlu0 %576, %v528_v19  }
  0x8e   :  { %v356_v20 = vpop.permute.xlu0 %355 }
  0x92   :  { %v532_v29 = vpop.permute.xlu0 %531 }
  0xdf   :  { %v272_v21 = vpop.f32.mrb[0].mxu0  ;;  %v343_v22 = vpop.f32.mrb[0].mxu1 }
  0xe0   :  { %v358_v23 = vadd.f32 %v356_v20, %v272_v21  ;;  %v360_v24 = vadd.f32 %v356_v20, %v343_v22  ;;  %v274_v25 = vpop.f32.mrb[1].mxu0  ;;  %v345_v26 = vpop.f32.mrb[1].mxu1 }
  0xe1   :  { %v359_v27 = vadd.f32 %v356_v20, %v274_v25  ;;  %v361_v28 = vadd.f32 %v356_v20, %v345_v26 }
  0xe2   :  { %538 = vst [vmem:[%s721_s8] sm:$0xff] %v358_v23  ;;  %540 = vst [vmem:[%s721_s8 + $0x10] sm:$0xff] %v360_v24 }
  0xe3   :  { %539 = vst [vmem:[%s721_s8 + $0x8] sm:$0xff] %v359_v27  ;;  %541 = vst [vmem:[%s721_s8 + $0x18] sm:$0xff] %v361_v28  ;;  %v448_v30 = vpop.f32.mrb[2].mxu0  ;;  %v519_v31 = vpop.f32.mrb[2].mxu1 }
  0xe4   :  { %v534_v32 = vadd.f32 %v532_v29, %v448_v30  ;;  %v536_v33 = vadd.f32 %v532_v29, %v519_v31  ;;  %v450_v34 = vpop.f32.mrb[3].mxu0  ;;  %v521_v35 = vpop.f32.mrb[3].mxu1 }
  0xe5   :  { %v535_v36 = vadd.f32 %v532_v29, %v450_v34  ;;  %v537_v37 = vadd.f32 %v532_v29, %v521_v35 }
  0xe6   :  { %542 = vst [vmem:[%s722_s9] sm:$0xff] %v534_v32  ;;  %544 = vst [vmem:[%s722_s9 + $0x10] sm:$0xff] %v536_v33 }
  0xe7   :  { %543 = vst [vmem:[%s722_s9 + $0x8] sm:$0xff] %v535_v36  ;;  %545 = vst [vmem:[%s722_s9 + $0x18] sm:$0xff] %v537_v37 }

</bundles_post_ra>
